<compile_context>
chip_gen: v7x
topology: tpu7x:2x2x1
jax: 0.10.0
libtpu: 0.0.40
codegen_flags: <defaults>
</compile_context>

<pallas_src>
import math
import functools
import jax
import jax.numpy as jnp
from jax.experimental import pallas as pl
from jax.experimental.pallas import tpu as pltpu

HIDDEN = 64
HEADS = 4
HEAD_DIM = HIDDEN // HEADS
INTER = 128
LAYERS = 2
MAX_POS = 512
LN_EPS = 1e-12
NEG_INF = -1e9
CLF_PAD = 128        # lane-dense padded classifier output width (3 real logits in cols 0..2)
QKV_SEC = 128        # each Q/K/V section padded to a full 128-lane-aligned slot


# ---------------------------------------------------------------- helpers ----
def _layer_norm(x, gamma, beta):
    mean = jnp.mean(x, axis=-1, keepdims=True)
    var = jnp.mean(jnp.square(x - mean), axis=-1, keepdims=True)
    return (x - mean) * jax.lax.rsqrt(var + LN_EPS) * gamma + beta


def _gelu(x):
    # TODO(synk): HF BERT uses exact erf-GELU; tanh approximation used for guaranteed Mosaic lowering.
    c = math.sqrt(2.0 / math.pi)
    return 0.5 * x * (1.0 + jnp.tanh(c * (x + 0.044715 * x * x * x)))


def _mm(a, b):
    # f32 activation x bf16-resident weight -> MXU with f32 accumulation (no weight cast needed).
    return jnp.dot(a.astype(jnp.bfloat16), b, preferred_element_type=jnp.float32)


# ----------------------------------------------------- per-layer fused kernel ----
def behrt_layer_kernel(x_ref, bias_ref, aux_ref, eg_ref, eb_ref,
                       wqkv_ref, bqkv_ref, wo_ref, bo_ref,
                       ln1g_ref, ln1b_ref, w1_ref, b1_ref,
                       w2_ref, b2_ref, ln2g_ref, ln2b_ref,
                       clfw_ref, clfb_ref, logits_ref, act_ref,
                       *, batch, seq):
    l = pl.program_id(0)
    scale = 1.0 / math.sqrt(HEAD_DIM)

    # ---- layer 0: BERT embedding LayerNorm -> resident activation (B*S, H) f32 ----
    @pl.when(l == 0)
    def _():
        act_ref[...] = _layer_norm(x_ref[...].astype(jnp.float32),
                                   eg_ref[...], eb_ref[...])

    x = act_ref[...]              # (B*S, H) f32, resident in VMEM across the layer grid
    bias = bias_ref[...]          # (B*S, B*S) block-diagonal + padding additive bias (read once)

    # ---- self-attention: fused Q|K|V projection with 128-lane-aligned sections ----
    qkv = _mm(x, wqkv_ref[...]) + bqkv_ref[...]                  # (B*S, 3*QKV_SEC) f32
    q = qkv[:, 0 * QKV_SEC:0 * QKV_SEC + HIDDEN] * scale
    k = qkv[:, 1 * QKV_SEC:1 * QKV_SEC + HIDDEN]
    v = qkv[:, 2 * QKV_SEC:2 * QKV_SEC + HIDDEN]

    ctx_heads = []
    for h in range(HEADS):                                       # static unroll, 4 heads
        sl = slice(h * HEAD_DIM, (h + 1) * HEAD_DIM)
        qh = q[:, sl].astype(jnp.bfloat16)
        kh = k[:, sl].astype(jnp.bfloat16)
        vh = v[:, sl].astype(jnp.bfloat16)
        # single 2D (B*S, B*S) score matmul; batch separation handled by the additive bias
        s = jax.lax.dot_general(qh, kh, (((1,), (1,)), ((), ())),
                                preferred_element_type=jnp.float32)
        s = s + bias
        s = s - jnp.max(s, axis=-1, keepdims=True)
        p = jnp.exp(s)
        p = p * pl.reciprocal(jnp.sum(p, axis=-1, keepdims=True), approx=True)
        ctx_heads.append(jnp.dot(p.astype(jnp.bfloat16), vh,
                                 preferred_element_type=jnp.float32))   # (B*S, Dh)

    ctx = jnp.concatenate(ctx_heads, axis=-1)                    # (B*S, H)
    attn = _mm(ctx, wo_ref[...]) + bo_ref[...]                   # one K=H output projection

    x = _layer_norm(x + attn, ln1g_ref[...], ln1b_ref[...])

    # ---- feed-forward ----
    inter = _gelu(_mm(x, w1_ref[...]) + b1_ref[...])             # (B*S, I)
    ffn = _mm(inter, w2_ref[...]) + b2_ref[...]                  # (B*S, H)
    x = _layer_norm(x + ffn, ln2g_ref[...], ln2b_ref[...])
    act_ref[...] = x

    # ---- last layer: CLS rows + summed auxiliary embeddings -> padded classifier matmul ----
    @pl.when(l == LAYERS - 1)
    def _():
        cls = jnp.concatenate([x[b * seq:b * seq + 1, :] for b in range(batch)], axis=0)  # (B, H)
        feat = cls + aux_ref[...]
        logits_ref[...] = _mm(feat, clfw_ref[...]) + clfb_ref[...]       # (B, CLF_PAD)


# --------------------------------------------------------------- wrapper -----
def behrt_forward(params, input_ids, age_ids, segment_ids, admission_loc_ids,
                  discharge_loc_ids, gender_ids, ethnicity_ids, insurance_ids,
                  attention_mask=None):
    B, S = input_ids.shape
    BS = B * S
    if attention_mask is None:
        attention_mask = (input_ids != 0)
    mask = attention_mask.astype(jnp.float32)                        # (B, S)

    # BERT embeddings (word + position + token_type=0); LayerNorm happens in-kernel.
    x = (params['word_emb'][input_ids]
         + params['pos_emb'][:S][None, :, :]
         + params['type_emb'][0][None, None, :])
    x = x.reshape(BS, HIDDEN).astype(jnp.bfloat16)                   # 2D bf16 kernel input

    # Layer-invariant additive attention bias, with a block-diagonal batch mask folded in so the
    # kernel can use one (B*S, B*S) score matmul per head (no 3D einsums / reshapes in-kernel).
    key_bias = ((1.0 - mask) * NEG_INF).reshape(BS)                  # (BS,)
    row_batch = jnp.repeat(jnp.arange(B), S)                         # (BS,)
    same = (row_batch[:, None] == row_batch[None, :]).astype(jnp.float32)
    bias = same * key_bias[None, :] + (1.0 - same) * NEG_INF         # (BS, BS)

    # Auxiliary embedding gathers (no clean Pallas equivalent) — only the CLS row feeds the
    # classifiers in the reference forward, so gather/sum position 0 only (matches PyTorch output).
    def cls_emb(ids, tbl):
        return tbl[jnp.clip(ids[:, 0], 0, tbl.shape[0] - 1)]
    aux = (cls_emb(age_ids, params['age_emb'])
           + cls_emb(segment_ids, params['seg_emb'])
           + cls_emb(admission_loc_ids, params['adm_emb'])
           + cls_emb(discharge_loc_ids, params['dis_emb'])
           + cls_emb(gender_ids, params['gen_emb'])
           + cls_emb(ethnicity_ids, params['eth_emb'])
           + cls_emb(insurance_ids, params['ins_emb']))              # (B, H)

    kernel = functools.partial(behrt_layer_kernel, batch=B, seq=S)

    full = lambda a: pl.BlockSpec(a.shape, lambda l: (0,) * a.ndim)          # layer-invariant, resident
    perlayer = lambda a: pl.BlockSpec((None,) + a.shape[1:], lambda l: (l, 0, 0))  # streamed per layer

    args = (x, bias, aux,
            params['emb_ln_g'], params['emb_ln_b'],
            params['wqkv'], params['bqkv'], params['wo'], params['bo'],
            params['ln1g'], params['ln1b'], params['w1'], params['b1'],
            params['w2'], params['b2'], params['ln2g'], params['ln2b'],
            params['clf_w'], params['clf_b'])

    in_specs = [full(x), full(bias), full(aux),
                full(params['emb_ln_g']), full(params['emb_ln_b']),
                perlayer(params['wqkv']), perlayer(params['bqkv']),
                perlayer(params['wo']), perlayer(params['bo']),
                perlayer(params['ln1g']), perlayer(params['ln1b']),
                perlayer(params['w1']), perlayer(params['b1']),
                perlayer(params['w2']), perlayer(params['b2']),
                perlayer(params['ln2g']), perlayer(params['ln2b']),
                full(params['clf_w']), full(params['clf_b'])]

    logits = pl.pallas_call(
        kernel,
        out_shape=jax.ShapeDtypeStruct((B, CLF_PAD), jnp.float32),
        grid_spec=pltpu.PrefetchScalarGridSpec(
            num_scalar_prefetch=0,
            grid=(LAYERS,),
            in_specs=in_specs,
            out_specs=pl.BlockSpec((B, CLF_PAD), lambda l: (0, 0)),
            scratch_shapes=[pltpu.VMEM((BS, HIDDEN), jnp.float32)]),   # resident activation
        compiler_params=pltpu.CompilerParams(
            dimension_semantics=("arbitrary",),
            # raise toward ~100 MiB on v6e at the real 768/3072/12L config
            vmem_limit_bytes=32 * 1024 * 1024),
    )(*args)

    logits_mortality = logits[:, 0:1]
    logits_los = logits[:, 1:2]
    logits_mech = logits[:, 2:3]
    return logits_mortality, logits_los, logits_mech


# ------------------------------------------------------------------ params ----
def init_params(key, vocab, num_ages, num_segments, num_adm, num_dis_loc,
                num_gen, num_eth, num_ins):
    keys = iter(jax.random.split(key, 64))

    def nrm(shape, scale=0.02):
        return (scale * jax.random.normal(next(keys), shape)).astype(jnp.float32)

    zeros = lambda s: jnp.zeros(s, jnp.float32)
    ones = lambda s: jnp.ones(s, jnp.float32)
    bf16 = lambda a: a.astype(jnp.bfloat16)

    # fused Q|K|V weight; each section sits at a 128-lane-aligned slot (0 / 128 / 256)
    wq = nrm((LAYERS, HIDDEN, HIDDEN))
    wk = nrm((LAYERS, HIDDEN, HIDDEN))
    wv = nrm((LAYERS, HIDDEN, HIDDEN))
    wqkv = jnp.zeros((LAYERS, HIDDEN, 3 * QKV_SEC), jnp.float32)
    wqkv = wqkv.at[:, :, 0:HIDDEN].set(wq)
    wqkv = wqkv.at[:, :, QKV_SEC:QKV_SEC + HIDDEN].set(wk)
    wqkv = wqkv.at[:, :, 2 * QKV_SEC:2 * QKV_SEC + HIDDEN].set(wv)

    # classifier zero-padded to a lane-dense 128-wide output (cols: mortality, los, mech)
    clf_w = jnp.pad(nrm((HIDDEN, 3)), ((0, 0), (0, CLF_PAD - 3)))

    params = dict(
        word_emb=nrm((vocab, HIDDEN)),
        pos_emb=nrm((MAX_POS, HIDDEN)),
        type_emb=nrm((2, HIDDEN)),
        emb_ln_g=ones((1, HIDDEN)), emb_ln_b=zeros((1, HIDDEN)),
        # encoder weights stacked over layers; matmul weights stored bf16 in HBM
        wqkv=bf16(wqkv), bqkv=zeros((LAYERS, 1, 3 * QKV_SEC)),
        wo=bf16(nrm((LAYERS, HIDDEN, HIDDEN))), bo=zeros((LAYERS, 1, HIDDEN)),
        ln1g=ones((LAYERS, 1, HIDDEN)), ln1b=zeros((LAYERS, 1, HIDDEN)),
        w1=bf16(nrm((LAYERS, HIDDEN, INTER))), b1=zeros((LAYERS, 1, INTER)),
        w2=bf16(nrm((LAYERS, INTER, HIDDEN))), b2=zeros((LAYERS, 1, HIDDEN)),
        ln2g=ones((LAYERS, 1, HIDDEN)), ln2b=zeros((LAYERS, 1, HIDDEN)),
        age_emb=nrm((num_ages, HIDDEN)),
        seg_emb=nrm((num_segments, HIDDEN)),
        adm_emb=nrm((num_adm, HIDDEN)),
        dis_emb=nrm((num_dis_loc, HIDDEN)),
        gen_emb=nrm((num_gen, HIDDEN)),
        eth_emb=nrm((num_eth, HIDDEN)),
        ins_emb=nrm((num_ins, HIDDEN)),
        clf_w=bf16(clf_w), clf_b=zeros((1, CLF_PAD)),
    )
    return params


# -------------------------------------------------------------------- main ----
if __name__ == "__main__":
    key = jax.random.PRNGKey(0)
    B, S = 2, 8
    num_diseases, num_ages, num_segments = 20, 10, 2
    num_adm, num_dis_loc, num_gen, num_eth, num_ins = 5, 5, 2, 3, 3
    vocab = num_diseases + num_ages + num_segments + num_adm + num_dis_loc + 2

    ks = jax.random.split(key, 10)
    input_ids = jax.random.randint(ks[0], (B, S), 0, num_diseases, dtype=jnp.int32)
    age_ids = jax.random.randint(ks[1], (B, S), 0, num_ages, dtype=jnp.int32)
    segment_ids = jax.random.randint(ks[2], (B, S), 0, num_segments, dtype=jnp.int32)
    admission_loc_ids = jax.random.randint(ks[3], (B, S), 0, num_adm, dtype=jnp.int32)
    discharge_loc_ids = jax.random.randint(ks[4], (B, S), 0, num_dis_loc, dtype=jnp.int32)
    gender_ids = jax.random.randint(ks[5], (B, S), 0, num_gen, dtype=jnp.int32)
    ethnicity_ids = jax.random.randint(ks[6], (B, S), 0, num_eth, dtype=jnp.int32)
    insurance_ids = jax.random.randint(ks[7], (B, S), 0, num_ins, dtype=jnp.int32)

    params = init_params(ks[9], vocab, num_ages, num_segments, num_adm,
                         num_dis_loc, num_gen, num_eth, num_ins)

    fwd = jax.jit(behrt_forward)
    outs = fwd(params, input_ids, age_ids, segment_ids,
               admission_loc_ids, discharge_loc_ids,
               gender_ids, ethnicity_ids, insurance_ids)
    outs = jax.block_until_ready(outs)
    assert outs[0].shape == (B, 1) and outs[1].shape == (B, 1) and outs[2].shape == (B, 1)
    assert all(bool(jnp.all(jnp.isfinite(o))) for o in outs)
    print("KERNEL_OK")
</pallas_src>

<mosaic_0001>
module attributes {stable_mosaic.version = 11 : i64} {
  func.func @behrt_layer_kernel(%arg0: i32, %arg1: memref<16x64xbf16, #tpu.memory_space<vmem>>, %arg2: memref<16x16xf32, #tpu.memory_space<vmem>>, %arg3: memref<2x64xf32, #tpu.memory_space<vmem>>, %arg4: memref<1x64xf32, #tpu.memory_space<vmem>>, %arg5: memref<1x64xf32, #tpu.memory_space<vmem>>, %arg6: memref<1x64x384xbf16, #tpu.memory_space<vmem>>, %arg7: memref<1x1x384xf32, #tpu.memory_space<vmem>>, %arg8: memref<1x64x64xbf16, #tpu.memory_space<vmem>>, %arg9: memref<1x1x64xf32, #tpu.memory_space<vmem>>, %arg10: memref<1x1x64xf32, #tpu.memory_space<vmem>>, %arg11: memref<1x1x64xf32, #tpu.memory_space<vmem>>, %arg12: memref<1x64x128xbf16, #tpu.memory_space<vmem>>, %arg13: memref<1x1x128xf32, #tpu.memory_space<vmem>>, %arg14: memref<1x128x64xbf16, #tpu.memory_space<vmem>>, %arg15: memref<1x1x64xf32, #tpu.memory_space<vmem>>, %arg16: memref<1x1x64xf32, #tpu.memory_space<vmem>>, %arg17: memref<1x1x64xf32, #tpu.memory_space<vmem>>, %arg18: memref<64x128xbf16, #tpu.memory_space<vmem>>, %arg19: memref<1x128xf32, #tpu.memory_space<vmem>>, %arg20: memref<2x128xf32, #tpu.memory_space<vmem>>, %arg21: memref<16x64xf32, #tpu.memory_space<vmem>>) attributes {dimension_semantics = [#tpu.dimension_semantics<arbitrary>], iteration_bounds = array<i64: 2>, scalar_prefetch = 0 : i64, scratch_operands = 1 : i64, tpu.core_type = #tpu.core_type<tc>, window_params = [{pipeline_mode = #tpu.pipeline_mode<synchronous>, transform_indices = @transform_0, window_bounds = array<i64: 16, 64>}, {pipeline_mode = #tpu.pipeline_mode<synchronous>, transform_indices = @transform_1, window_bounds = array<i64: 16, 16>}, {pipeline_mode = #tpu.pipeline_mode<synchronous>, transform_indices = @transform_2, window_bounds = array<i64: 2, 64>}, {pipeline_mode = #tpu.pipeline_mode<synchronous>, transform_indices = @transform_3, window_bounds = array<i64: 1, 64>}, {pipeline_mode = #tpu.pipeline_mode<synchronous>, transform_indices = @transform_4, window_bounds = array<i64: 1, 64>}, {transform_indices = @transform_5, window_bounds = array<i64: 1, 64, 384>}, {transform_indices = @transform_6, window_bounds = array<i64: 1, 1, 384>}, {transform_indices = @transform_7, window_bounds = array<i64: 1, 64, 64>}, {transform_indices = @transform_8, window_bounds = array<i64: 1, 1, 64>}, {transform_indices = @transform_9, window_bounds = array<i64: 1, 1, 64>}, {transform_indices = @transform_10, window_bounds = array<i64: 1, 1, 64>}, {transform_indices = @transform_11, window_bounds = array<i64: 1, 64, 128>}, {transform_indices = @transform_12, window_bounds = array<i64: 1, 1, 128>}, {transform_indices = @transform_13, window_bounds = array<i64: 1, 128, 64>}, {transform_indices = @transform_14, window_bounds = array<i64: 1, 1, 64>}, {transform_indices = @transform_15, window_bounds = array<i64: 1, 1, 64>}, {transform_indices = @transform_16, window_bounds = array<i64: 1, 1, 64>}, {pipeline_mode = #tpu.pipeline_mode<synchronous>, transform_indices = @transform_17, window_bounds = array<i64: 64, 128>}, {pipeline_mode = #tpu.pipeline_mode<synchronous>, transform_indices = @transform_18, window_bounds = array<i64: 1, 128>}, {pipeline_mode = #tpu.pipeline_mode<synchronous>, transform_indices = @transform_19, window_bounds = array<i64: 2, 128>}]} {
    %c0_i32 = arith.constant 0 : i32
    %0 = arith.cmpi eq, %arg0, %c0_i32 : i32
    %1 = arith.extui %0 : i1 to i32
    %c0_i32_0 = arith.constant 0 : i32
    %2 = arith.cmpi ne, %1, %c0_i32_0 : i32
    scf.if %2 {
      %c0_77 = arith.constant 0 : index
      %c0_78 = arith.constant 0 : index
      %194 = vector.load %arg1[%c0_77, %c0_78] : memref<16x64xbf16, #tpu.memory_space<vmem>>, vector<16x64xbf16>
      %195 = arith.extf %194 : vector<16x64xbf16> to vector<16x64xf32>
      %c0_79 = arith.constant 0 : index
      %c0_80 = arith.constant 0 : index
      %196 = vector.load %arg4[%c0_79, %c0_80] : memref<1x64xf32, #tpu.memory_space<vmem>>, vector<1x64xf32>
      %c0_81 = arith.constant 0 : index
      %c0_82 = arith.constant 0 : index
      %197 = vector.load %arg5[%c0_81, %c0_82] : memref<1x64xf32, #tpu.memory_space<vmem>>, vector<1x64xf32>
      %cst_83 = arith.constant dense<0.000000e+00> : vector<16xf32>
      %198 = vector.multi_reduction <add>, %195, %cst_83 [1] : vector<16x64xf32> to vector<16xf32>
      %199 = vector.shape_cast %198 : vector<16xf32> to vector<16x1xf32>
      %cst_84 = arith.constant 6.400000e+01 : f32
      %200 = vector.broadcast %cst_84 : f32 to vector<16x1xf32>
      %201 = arith.divf %199, %200 : vector<16x1xf32>
      %202 = vector.broadcast %201 : vector<16x1xf32> to vector<16x64xf32>
      %203 = arith.subf %195, %202 : vector<16x64xf32>
      %204 = arith.mulf %203, %203 : vector<16x64xf32>
      %cst_85 = arith.constant dense<0.000000e+00> : vector<16xf32>
      %205 = vector.multi_reduction <add>, %204, %cst_85 [1] : vector<16x64xf32> to vector<16xf32>
      %206 = vector.shape_cast %205 : vector<16xf32> to vector<16x1xf32>
      %cst_86 = arith.constant 6.400000e+01 : f32
      %207 = vector.broadcast %cst_86 : f32 to vector<16x1xf32>
      %208 = arith.divf %206, %207 : vector<16x1xf32>
      %209 = vector.broadcast %201 : vector<16x1xf32> to vector<16x64xf32>
      %210 = arith.subf %195, %209 : vector<16x64xf32>
      %cst_87 = arith.constant 9.99999996E-13 : f32
      %211 = vector.broadcast %cst_87 : f32 to vector<16x1xf32>
      %212 = arith.addf %208, %211 : vector<16x1xf32>
      %213 = math.rsqrt %212 : vector<16x1xf32>
      %214 = vector.broadcast %213 : vector<16x1xf32> to vector<16x64xf32>
      %215 = arith.mulf %210, %214 : vector<16x64xf32>
      %216 = vector.broadcast %196 : vector<1x64xf32> to vector<16x64xf32>
      %217 = arith.mulf %215, %216 : vector<16x64xf32>
      %218 = vector.broadcast %197 : vector<1x64xf32> to vector<16x64xf32>
      %219 = arith.addf %217, %218 : vector<16x64xf32>
      %c0_88 = arith.constant 0 : index
      %c0_89 = arith.constant 0 : index
      %220 = vector.load %arg21[%c0_88, %c0_89] : memref<16x64xf32, #tpu.memory_space<vmem>>, vector<16x64xf32>
      tpu.vector_store %arg21[%c0_88, %c0_89], %219 {strides = array<i32>} : memref<16x64xf32, #tpu.memory_space<vmem>>, vector<16x64xf32>,
    } else {
    }
    %c0 = arith.constant 0 : index
    %c0_1 = arith.constant 0 : index
    %3 = vector.load %arg21[%c0, %c0_1] : memref<16x64xf32, #tpu.memory_space<vmem>>, vector<16x64xf32>
    %c0_2 = arith.constant 0 : index
    %c0_3 = arith.constant 0 : index
    %4 = vector.load %arg2[%c0_2, %c0_3] : memref<16x16xf32, #tpu.memory_space<vmem>>, vector<16x16xf32>
    %c0_4 = arith.constant 0 : index
    %c0_5 = arith.constant 0 : index
    %c0_6 = arith.constant 0 : index
    %5 = vector.load %arg6[%c0_4, %c0_5, %c0_6] : memref<1x64x384xbf16, #tpu.memory_space<vmem>>, vector<1x64x384xbf16>
    %6 = vector.shape_cast %5 : vector<1x64x384xbf16> to vector<64x384xbf16>
    %7 = arith.truncf %3 : vector<16x64xf32> to vector<16x64xbf16>
    %cst = arith.constant dense<0.000000e+00> : vector<16x384xf32>
    %8 = tpu.matmul %7, %6, %cst {dimension_numbers = #tpu.dot_dimension_numbers<[1], [0], [0], [1], [0, 0, 1, 1], [], []>} : vector<16x64xbf16>, vector<64x384xbf16>, vector<16x384xf32> -> vector<16x384xf32>
    %c0_7 = arith.constant 0 : index
    %c0_8 = arith.constant 0 : index
    %c0_9 = arith.constant 0 : index
    %9 = vector.load %arg7[%c0_7, %c0_8, %c0_9] : memref<1x1x384xf32, #tpu.memory_space<vmem>>, vector<1x1x384xf32>
    %10 = vector.shape_cast %9 : vector<1x1x384xf32> to vector<1x384xf32>
    %11 = vector.broadcast %10 : vector<1x384xf32> to vector<16x384xf32>
    %12 = arith.addf %8, %11 : vector<16x384xf32>
    %13 = vector.extract_strided_slice %12 {offsets = [0, 0], sizes = [16, 64], strides = [1, 1]} : vector<16x384xf32> to vector<16x64xf32>
    %cst_10 = arith.constant 2.500000e-01 : f32
    %14 = vector.broadcast %cst_10 : f32 to vector<16x64xf32>
    %15 = arith.mulf %13, %14 : vector<16x64xf32>
    %16 = vector.extract_strided_slice %12 {offsets = [0, 128], sizes = [16, 64], strides = [1, 1]} : vector<16x384xf32> to vector<16x64xf32>
    %17 = vector.extract_strided_slice %12 {offsets = [0, 256], sizes = [16, 64], strides = [1, 1]} : vector<16x384xf32> to vector<16x64xf32>
    %18 = vector.extract_strided_slice %15 {offsets = [0, 0], sizes = [16, 16], strides = [1, 1]} : vector<16x64xf32> to vector<16x16xf32>
    %19 = arith.truncf %18 : vector<16x16xf32> to vector<16x16xbf16>
    %20 = vector.extract_strided_slice %16 {offsets = [0, 0], sizes = [16, 16], strides = [1, 1]} : vector<16x64xf32> to vector<16x16xf32>
    %21 = arith.truncf %20 : vector<16x16xf32> to vector<16x16xbf16>
    %22 = vector.extract_strided_slice %17 {offsets = [0, 0], sizes = [16, 16], strides = [1, 1]} : vector<16x64xf32> to vector<16x16xf32>
    %23 = arith.truncf %22 : vector<16x16xf32> to vector<16x16xbf16>
    %cst_11 = arith.constant dense<0.000000e+00> : vector<16x16xf32>
    %24 = tpu.matmul %19, %21, %cst_11 {dimension_numbers = #tpu.dot_dimension_numbers<[1], [1], [0], [0], [0, 0, 1, 0], [], []>} : vector<16x16xbf16>, vector<16x16xbf16>, vector<16x16xf32> -> vector<16x16xf32>
    %25 = arith.addf %24, %4 : vector<16x16xf32>
    %cst_12 = arith.constant dense<0xFF800000> : vector<16xf32>
    %26 = vector.multi_reduction <maximumf>, %25, %cst_12 [1] : vector<16x16xf32> to vector<16xf32>
    %27 = vector.shape_cast %26 : vector<16xf32> to vector<16x1xf32>
    %28 = vector.broadcast %27 : vector<16x1xf32> to vector<16x16xf32>
    %29 = arith.subf %25, %28 : vector<16x16xf32>
    %30 = math.exp %29 : vector<16x16xf32>
    %cst_13 = arith.constant dense<0.000000e+00> : vector<16xf32>
    %31 = vector.multi_reduction <add>, %30, %cst_13 [1] : vector<16x16xf32> to vector<16xf32>
    %32 = vector.shape_cast %31 : vector<16xf32> to vector<16x1xf32>
    %33 = tpu.reciprocal %32 {approx = true} : vector<16x1xf32> -> vector<16x1xf32>
    %34 = vector.broadcast %33 : vector<16x1xf32> to vector<16x16xf32>
    %35 = arith.mulf %30, %34 : vector<16x16xf32>
    %36 = arith.truncf %35 : vector<16x16xf32> to vector<16x16xbf16>
    %cst_14 = arith.constant dense<0.000000e+00> : vector<16x16xf32>
    %37 = tpu.matmul %36, %23, %cst_14 {dimension_numbers = #tpu.dot_dimension_numbers<[1], [0], [0], [1], [0, 0, 1, 1], [], []>} : vector<16x16xbf16>, vector<16x16xbf16>, vector<16x16xf32> -> vector<16x16xf32>
    %38 = vector.extract_strided_slice %15 {offsets = [0, 16], sizes = [16, 16], strides = [1, 1]} : vector<16x64xf32> to vector<16x16xf32>
    %39 = arith.truncf %38 : vector<16x16xf32> to vector<16x16xbf16>
    %40 = vector.extract_strided_slice %16 {offsets = [0, 16], sizes = [16, 16], strides = [1, 1]} : vector<16x64xf32> to vector<16x16xf32>
    %41 = arith.truncf %40 : vector<16x16xf32> to vector<16x16xbf16>
    %42 = vector.extract_strided_slice %17 {offsets = [0, 16], sizes = [16, 16], strides = [1, 1]} : vector<16x64xf32> to vector<16x16xf32>
    %43 = arith.truncf %42 : vector<16x16xf32> to vector<16x16xbf16>
    %cst_15 = arith.constant dense<0.000000e+00> : vector<16x16xf32>
    %44 = tpu.matmul %39, %41, %cst_15 {dimension_numbers = #tpu.dot_dimension_numbers<[1], [1], [0], [0], [0, 0, 1, 0], [], []>} : vector<16x16xbf16>, vector<16x16xbf16>, vector<16x16xf32> -> vector<16x16xf32>
    %45 = arith.addf %44, %4 : vector<16x16xf32>
    %cst_16 = arith.constant dense<0xFF800000> : vector<16xf32>
    %46 = vector.multi_reduction <maximumf>, %45, %cst_16 [1] : vector<16x16xf32> to vector<16xf32>
    %47 = vector.shape_cast %46 : vector<16xf32> to vector<16x1xf32>
    %48 = vector.broadcast %47 : vector<16x1xf32> to vector<16x16xf32>
    %49 = arith.subf %45, %48 : vector<16x16xf32>
    %50 = math.exp %49 : vector<16x16xf32>
    %cst_17 = arith.constant dense<0.000000e+00> : vector<16xf32>
    %51 = vector.multi_reduction <add>, %50, %cst_17 [1] : vector<16x16xf32> to vector<16xf32>
    %52 = vector.shape_cast %51 : vector<16xf32> to vector<16x1xf32>
    %53 = tpu.reciprocal %52 {approx = true} : vector<16x1xf32> -> vector<16x1xf32>
    %54 = vector.broadcast %53 : vector<16x1xf32> to vector<16x16xf32>
    %55 = arith.mulf %50, %54 : vector<16x16xf32>
    %56 = arith.truncf %55 : vector<16x16xf32> to vector<16x16xbf16>
    %cst_18 = arith.constant dense<0.000000e+00> : vector<16x16xf32>
    %57 = tpu.matmul %56, %43, %cst_18 {dimension_numbers = #tpu.dot_dimension_numbers<[1], [0], [0], [1], [0, 0, 1, 1], [], []>} : vector<16x16xbf16>, vector<16x16xbf16>, vector<16x16xf32> -> vector<16x16xf32>
    %58 = vector.extract_strided_slice %15 {offsets = [0, 32], sizes = [16, 16], strides = [1, 1]} : vector<16x64xf32> to vector<16x16xf32>
    %59 = arith.truncf %58 : vector<16x16xf32> to vector<16x16xbf16>
    %60 = vector.extract_strided_slice %16 {offsets = [0, 32], sizes = [16, 16], strides = [1, 1]} : vector<16x64xf32> to vector<16x16xf32>
    %61 = arith.truncf %60 : vector<16x16xf32> to vector<16x16xbf16>
    %62 = vector.extract_strided_slice %17 {offsets = [0, 32], sizes = [16, 16], strides = [1, 1]} : vector<16x64xf32> to vector<16x16xf32>
    %63 = arith.truncf %62 : vector<16x16xf32> to vector<16x16xbf16>
    %cst_19 = arith.constant dense<0.000000e+00> : vector<16x16xf32>
    %64 = tpu.matmul %59, %61, %cst_19 {dimension_numbers = #tpu.dot_dimension_numbers<[1], [1], [0], [0], [0, 0, 1, 0], [], []>} : vector<16x16xbf16>, vector<16x16xbf16>, vector<16x16xf32> -> vector<16x16xf32>
    %65 = arith.addf %64, %4 : vector<16x16xf32>
    %cst_20 = arith.constant dense<0xFF800000> : vector<16xf32>
    %66 = vector.multi_reduction <maximumf>, %65, %cst_20 [1] : vector<16x16xf32> to vector<16xf32>
    %67 = vector.shape_cast %66 : vector<16xf32> to vector<16x1xf32>
    %68 = vector.broadcast %67 : vector<16x1xf32> to vector<16x16xf32>
    %69 = arith.subf %65, %68 : vector<16x16xf32>
    %70 = math.exp %69 : vector<16x16xf32>
    %cst_21 = arith.constant dense<0.000000e+00> : vector<16xf32>
    %71 = vector.multi_reduction <add>, %70, %cst_21 [1] : vector<16x16xf32> to vector<16xf32>
    %72 = vector.shape_cast %71 : vector<16xf32> to vector<16x1xf32>
    %73 = tpu.reciprocal %72 {approx = true} : vector<16x1xf32> -> vector<16x1xf32>
    %74 = vector.broadcast %73 : vector<16x1xf32> to vector<16x16xf32>
    %75 = arith.mulf %70, %74 : vector<16x16xf32>
    %76 = arith.truncf %75 : vector<16x16xf32> to vector<16x16xbf16>
    %cst_22 = arith.constant dense<0.000000e+00> : vector<16x16xf32>
    %77 = tpu.matmul %76, %63, %cst_22 {dimension_numbers = #tpu.dot_dimension_numbers<[1], [0], [0], [1], [0, 0, 1, 1], [], []>} : vector<16x16xbf16>, vector<16x16xbf16>, vector<16x16xf32> -> vector<16x16xf32>
    %78 = vector.extract_strided_slice %15 {offsets = [0, 48], sizes = [16, 16], strides = [1, 1]} : vector<16x64xf32> to vector<16x16xf32>
    %79 = arith.truncf %78 : vector<16x16xf32> to vector<16x16xbf16>
    %80 = vector.extract_strided_slice %16 {offsets = [0, 48], sizes = [16, 16], strides = [1, 1]} : vector<16x64xf32> to vector<16x16xf32>
    %81 = arith.truncf %80 : vector<16x16xf32> to vector<16x16xbf16>
    %82 = vector.extract_strided_slice %17 {offsets = [0, 48], sizes = [16, 16], strides = [1, 1]} : vector<16x64xf32> to vector<16x16xf32>
    %83 = arith.truncf %82 : vector<16x16xf32> to vector<16x16xbf16>
    %cst_23 = arith.constant dense<0.000000e+00> : vector<16x16xf32>
    %84 = tpu.matmul %79, %81, %cst_23 {dimension_numbers = #tpu.dot_dimension_numbers<[1], [1], [0], [0], [0, 0, 1, 0], [], []>} : vector<16x16xbf16>, vector<16x16xbf16>, vector<16x16xf32> -> vector<16x16xf32>
    %85 = arith.addf %84, %4 : vector<16x16xf32>
    %cst_24 = arith.constant dense<0xFF800000> : vector<16xf32>
    %86 = vector.multi_reduction <maximumf>, %85, %cst_24 [1] : vector<16x16xf32> to vector<16xf32>
    %87 = vector.shape_cast %86 : vector<16xf32> to vector<16x1xf32>
    %88 = vector.broadcast %87 : vector<16x1xf32> to vector<16x16xf32>
    %89 = arith.subf %85, %88 : vector<16x16xf32>
    %90 = math.exp %89 : vector<16x16xf32>
    %cst_25 = arith.constant dense<0.000000e+00> : vector<16xf32>
    %91 = vector.multi_reduction <add>, %90, %cst_25 [1] : vector<16x16xf32> to vector<16xf32>
    %92 = vector.shape_cast %91 : vector<16xf32> to vector<16x1xf32>
    %93 = tpu.reciprocal %92 {approx = true} : vector<16x1xf32> -> vector<16x1xf32>
    %94 = vector.broadcast %93 : vector<16x1xf32> to vector<16x16xf32>
    %95 = arith.mulf %90, %94 : vector<16x16xf32>
    %96 = arith.truncf %95 : vector<16x16xf32> to vector<16x16xbf16>
    %cst_26 = arith.constant dense<0.000000e+00> : vector<16x16xf32>
    %97 = tpu.matmul %96, %83, %cst_26 {dimension_numbers = #tpu.dot_dimension_numbers<[1], [0], [0], [1], [0, 0, 1, 1], [], []>} : vector<16x16xbf16>, vector<16x16xbf16>, vector<16x16xf32> -> vector<16x16xf32>
    %98 = tpu.concatenate %37, %57, %77, %97 in 1 : vector<16x16xf32>, vector<16x16xf32>, vector<16x16xf32>, vector<16x16xf32> -> vector<16x64xf32>
    %c0_27 = arith.constant 0 : index
    %c0_28 = arith.constant 0 : index
    %c0_29 = arith.constant 0 : index
    %99 = vector.load %arg8[%c0_27, %c0_28, %c0_29] : memref<1x64x64xbf16, #tpu.memory_space<vmem>>, vector<1x64x64xbf16>
    %100 = vector.shape_cast %99 : vector<1x64x64xbf16> to vector<64x64xbf16>
    %101 = arith.truncf %98 : vector<16x64xf32> to vector<16x64xbf16>
    %cst_30 = arith.constant dense<0.000000e+00> : vector<16x64xf32>
    %102 = tpu.matmul %101, %100, %cst_30 {dimension_numbers = #tpu.dot_dimension_numbers<[1], [0], [0], [1], [0, 0, 1, 1], [], []>} : vector<16x64xbf16>, vector<64x64xbf16>, vector<16x64xf32> -> vector<16x64xf32>
    %c0_31 = arith.constant 0 : index
    %c0_32 = arith.constant 0 : index
    %c0_33 = arith.constant 0 : index
    %103 = vector.load %arg9[%c0_31, %c0_32, %c0_33] : memref<1x1x64xf32, #tpu.memory_space<vmem>>, vector<1x1x64xf32>
    %104 = vector.shape_cast %103 : vector<1x1x64xf32> to vector<1x64xf32>
    %105 = vector.broadcast %104 : vector<1x64xf32> to vector<16x64xf32>
    %106 = arith.addf %102, %105 : vector<16x64xf32>
    %107 = arith.addf %3, %106 : vector<16x64xf32>
    %c0_34 = arith.constant 0 : index
    %c0_35 = arith.constant 0 : index
    %c0_36 = arith.constant 0 : index
    %108 = vector.load %arg10[%c0_34, %c0_35, %c0_36] : memref<1x1x64xf32, #tpu.memory_space<vmem>>, vector<1x1x64xf32>
    %109 = vector.shape_cast %108 : vector<1x1x64xf32> to vector<1x64xf32>
    %c0_37 = arith.constant 0 : index
    %c0_38 = arith.constant 0 : index
    %c0_39 = arith.constant 0 : index
    %110 = vector.load %arg11[%c0_37, %c0_38, %c0_39] : memref<1x1x64xf32, #tpu.memory_space<vmem>>, vector<1x1x64xf32>
    %111 = vector.shape_cast %110 : vector<1x1x64xf32> to vector<1x64xf32>
    %cst_40 = arith.constant dense<0.000000e+00> : vector<16xf32>
    %112 = vector.multi_reduction <add>, %107, %cst_40 [1] : vector<16x64xf32> to vector<16xf32>
    %113 = vector.shape_cast %112 : vector<16xf32> to vector<16x1xf32>
    %cst_41 = arith.constant 6.400000e+01 : f32
    %114 = vector.broadcast %cst_41 : f32 to vector<16x1xf32>
    %115 = arith.divf %113, %114 : vector<16x1xf32>
    %116 = vector.broadcast %115 : vector<16x1xf32> to vector<16x64xf32>
    %117 = arith.subf %107, %116 : vector<16x64xf32>
    %118 = arith.mulf %117, %117 : vector<16x64xf32>
    %cst_42 = arith.constant dense<0.000000e+00> : vector<16xf32>
    %119 = vector.multi_reduction <add>, %118, %cst_42 [1] : vector<16x64xf32> to vector<16xf32>
    %120 = vector.shape_cast %119 : vector<16xf32> to vector<16x1xf32>
    %cst_43 = arith.constant 6.400000e+01 : f32
    %121 = vector.broadcast %cst_43 : f32 to vector<16x1xf32>
    %122 = arith.divf %120, %121 : vector<16x1xf32>
    %123 = vector.broadcast %115 : vector<16x1xf32> to vector<16x64xf32>
    %124 = arith.subf %107, %123 : vector<16x64xf32>
    %cst_44 = arith.constant 9.99999996E-13 : f32
    %125 = vector.broadcast %cst_44 : f32 to vector<16x1xf32>
    %126 = arith.addf %122, %125 : vector<16x1xf32>
    %127 = math.rsqrt %126 : vector<16x1xf32>
    %128 = vector.broadcast %127 : vector<16x1xf32> to vector<16x64xf32>
    %129 = arith.mulf %124, %128 : vector<16x64xf32>
    %130 = vector.broadcast %109 : vector<1x64xf32> to vector<16x64xf32>
    %131 = arith.mulf %129, %130 : vector<16x64xf32>
    %132 = vector.broadcast %111 : vector<1x64xf32> to vector<16x64xf32>
    %133 = arith.addf %131, %132 : vector<16x64xf32>
    %c0_45 = arith.constant 0 : index
    %c0_46 = arith.constant 0 : index
    %c0_47 = arith.constant 0 : index
    %134 = vector.load %arg12[%c0_45, %c0_46, %c0_47] : memref<1x64x128xbf16, #tpu.memory_space<vmem>>, vector<1x64x128xbf16>
    %135 = vector.shape_cast %134 : vector<1x64x128xbf16> to vector<64x128xbf16>
    %136 = arith.truncf %133 : vector<16x64xf32> to vector<16x64xbf16>
    %cst_48 = arith.constant dense<0.000000e+00> : vector<16x128xf32>
    %137 = tpu.matmul %136, %135, %cst_48 {dimension_numbers = #tpu.dot_dimension_numbers<[1], [0], [0], [1], [0, 0, 1, 1], [], []>} : vector<16x64xbf16>, vector<64x128xbf16>, vector<16x128xf32> -> vector<16x128xf32>
    %c0_49 = arith.constant 0 : index
    %c0_50 = arith.constant 0 : index
    %c0_51 = arith.constant 0 : index
    %138 = vector.load %arg13[%c0_49, %c0_50, %c0_51] : memref<1x1x128xf32, #tpu.memory_space<vmem>>, vector<1x1x128xf32>
    %139 = vector.shape_cast %138 : vector<1x1x128xf32> to vector<1x128xf32>
    %140 = vector.broadcast %139 : vector<1x128xf32> to vector<16x128xf32>
    %141 = arith.addf %137, %140 : vector<16x128xf32>
    %cst_52 = arith.constant 5.000000e-01 : f32
    %142 = vector.broadcast %cst_52 : f32 to vector<16x128xf32>
    %143 = arith.mulf %142, %141 : vector<16x128xf32>
    %cst_53 = arith.constant 4.471500e-02 : f32
    %144 = vector.broadcast %cst_53 : f32 to vector<16x128xf32>
    %145 = arith.mulf %144, %141 : vector<16x128xf32>
    %146 = arith.mulf %145, %141 : vector<16x128xf32>
    %147 = arith.mulf %146, %141 : vector<16x128xf32>
    %148 = arith.addf %141, %147 : vector<16x128xf32>
    %cst_54 = arith.constant 0.797884583 : f32
    %149 = vector.broadcast %cst_54 : f32 to vector<16x128xf32>
    %150 = arith.mulf %149, %148 : vector<16x128xf32>
    %151 = math.tanh %150 : vector<16x128xf32>
    %cst_55 = arith.constant 1.000000e+00 : f32
    %152 = vector.broadcast %cst_55 : f32 to vector<16x128xf32>
    %153 = arith.addf %152, %151 : vector<16x128xf32>
    %154 = arith.mulf %143, %153 : vector<16x128xf32>
    %c0_56 = arith.constant 0 : index
    %c0_57 = arith.constant 0 : index
    %c0_58 = arith.constant 0 : index
    %155 = vector.load %arg14[%c0_56, %c0_57, %c0_58] : memref<1x128x64xbf16, #tpu.memory_space<vmem>>, vector<1x128x64xbf16>
    %156 = vector.shape_cast %155 : vector<1x128x64xbf16> to vector<128x64xbf16>
    %157 = arith.truncf %154 : vector<16x128xf32> to vector<16x128xbf16>
    %cst_59 = arith.constant dense<0.000000e+00> : vector<16x64xf32>
    %158 = tpu.matmul %157, %156, %cst_59 {dimension_numbers = #tpu.dot_dimension_numbers<[1], [0], [0], [1], [0, 0, 1, 1], [], []>} : vector<16x128xbf16>, vector<128x64xbf16>, vector<16x64xf32> -> vector<16x64xf32>
    %c0_60 = arith.constant 0 : index
    %c0_61 = arith.constant 0 : index
    %c0_62 = arith.constant 0 : index
    %159 = vector.load %arg15[%c0_60, %c0_61, %c0_62] : memref<1x1x64xf32, #tpu.memory_space<vmem>>, vector<1x1x64xf32>
    %160 = vector.shape_cast %159 : vector<1x1x64xf32> to vector<1x64xf32>
    %161 = vector.broadcast %160 : vector<1x64xf32> to vector<16x64xf32>
    %162 = arith.addf %158, %161 : vector<16x64xf32>
    %163 = arith.addf %133, %162 : vector<16x64xf32>
    %c0_63 = arith.constant 0 : index
    %c0_64 = arith.constant 0 : index
    %c0_65 = arith.constant 0 : index
    %164 = vector.load %arg16[%c0_63, %c0_64, %c0_65] : memref<1x1x64xf32, #tpu.memory_space<vmem>>, vector<1x1x64xf32>
    %165 = vector.shape_cast %164 : vector<1x1x64xf32> to vector<1x64xf32>
    %c0_66 = arith.constant 0 : index
    %c0_67 = arith.constant 0 : index
    %c0_68 = arith.constant 0 : index
    %166 = vector.load %arg17[%c0_66, %c0_67, %c0_68] : memref<1x1x64xf32, #tpu.memory_space<vmem>>, vector<1x1x64xf32>
    %167 = vector.shape_cast %166 : vector<1x1x64xf32> to vector<1x64xf32>
    %cst_69 = arith.constant dense<0.000000e+00> : vector<16xf32>
    %168 = vector.multi_reduction <add>, %163, %cst_69 [1] : vector<16x64xf32> to vector<16xf32>
    %169 = vector.shape_cast %168 : vector<16xf32> to vector<16x1xf32>
    %cst_70 = arith.constant 6.400000e+01 : f32
    %170 = vector.broadcast %cst_70 : f32 to vector<16x1xf32>
    %171 = arith.divf %169, %170 : vector<16x1xf32>
    %172 = vector.broadcast %171 : vector<16x1xf32> to vector<16x64xf32>
    %173 = arith.subf %163, %172 : vector<16x64xf32>
    %174 = arith.mulf %173, %173 : vector<16x64xf32>
    %cst_71 = arith.constant dense<0.000000e+00> : vector<16xf32>
    %175 = vector.multi_reduction <add>, %174, %cst_71 [1] : vector<16x64xf32> to vector<16xf32>
    %176 = vector.shape_cast %175 : vector<16xf32> to vector<16x1xf32>
    %cst_72 = arith.constant 6.400000e+01 : f32
    %177 = vector.broadcast %cst_72 : f32 to vector<16x1xf32>
    %178 = arith.divf %176, %177 : vector<16x1xf32>
    %179 = vector.broadcast %171 : vector<16x1xf32> to vector<16x64xf32>
    %180 = arith.subf %163, %179 : vector<16x64xf32>
    %cst_73 = arith.constant 9.99999996E-13 : f32
    %181 = vector.broadcast %cst_73 : f32 to vector<16x1xf32>
    %182 = arith.addf %178, %181 : vector<16x1xf32>
    %183 = math.rsqrt %182 : vector<16x1xf32>
    %184 = vector.broadcast %183 : vector<16x1xf32> to vector<16x64xf32>
    %185 = arith.mulf %180, %184 : vector<16x64xf32>
    %186 = vector.broadcast %165 : vector<1x64xf32> to vector<16x64xf32>
    %187 = arith.mulf %185, %186 : vector<16x64xf32>
    %188 = vector.broadcast %167 : vector<1x64xf32> to vector<16x64xf32>
    %189 = arith.addf %187, %188 : vector<16x64xf32>
    %c0_74 = arith.constant 0 : index
    %c0_75 = arith.constant 0 : index
    %190 = vector.load %arg21[%c0_74, %c0_75] : memref<16x64xf32, #tpu.memory_space<vmem>>, vector<16x64xf32>
    tpu.vector_store %arg21[%c0_74, %c0_75], %189 {strides = array<i32>} : memref<16x64xf32, #tpu.memory_space<vmem>>, vector<16x64xf32>,
    %c1_i32 = arith.constant 1 : i32
    %191 = arith.cmpi eq, %arg0, %c1_i32 : i32
    %192 = arith.extui %191 : i1 to i32
    %c0_i32_76 = arith.constant 0 : i32
    %193 = arith.cmpi ne, %192, %c0_i32_76 : i32
    scf.if %193 {
      %194 = vector.extract_strided_slice %189 {offsets = [0, 0], sizes = [1, 64], strides = [1, 1]} : vector<16x64xf32> to vector<1x64xf32>
      %195 = vector.extract_strided_slice %189 {offsets = [8, 0], sizes = [1, 64], strides = [1, 1]} : vector<16x64xf32> to vector<1x64xf32>
      %196 = tpu.concatenate %194, %195 in 0 : vector<1x64xf32>, vector<1x64xf32> -> vector<2x64xf32>
      %c0_77 = arith.constant 0 : index
      %c0_78 = arith.constant 0 : index
      %197 = vector.load %arg3[%c0_77, %c0_78] : memref<2x64xf32, #tpu.memory_space<vmem>>, vector<2x64xf32>
      %198 = arith.addf %196, %197 : vector<2x64xf32>
      %c0_79 = arith.constant 0 : index
      %c0_80 = arith.constant 0 : index
      %199 = vector.load %arg18[%c0_79, %c0_80] : memref<64x128xbf16, #tpu.memory_space<vmem>>, vector<64x128xbf16>
      %200 = arith.truncf %198 : vector<2x64xf32> to vector<2x64xbf16>
      %cst_81 = arith.constant dense<0.000000e+00> : vector<2x128xf32>
      %201 = tpu.matmul %200, %199, %cst_81 {dimension_numbers = #tpu.dot_dimension_numbers<[1], [0], [0], [1], [0, 0, 1, 1], [], []>} : vector<2x64xbf16>, vector<64x128xbf16>, vector<2x128xf32> -> vector<2x128xf32>
      %c0_82 = arith.constant 0 : index
      %c0_83 = arith.constant 0 : index
      %202 = vector.load %arg19[%c0_82, %c0_83] : memref<1x128xf32, #tpu.memory_space<vmem>>, vector<1x128xf32>
      %203 = vector.broadcast %202 : vector<1x128xf32> to vector<2x128xf32>
      %204 = arith.addf %201, %203 : vector<2x128xf32>
      %c0_84 = arith.constant 0 : index
      %c0_85 = arith.constant 0 : index
      %205 = vector.load %arg20[%c0_84, %c0_85] : memref<2x128xf32, #tpu.memory_space<vmem>>, vector<2x128xf32>
      tpu.vector_store %arg20[%c0_84, %c0_85], %204 {strides = array<i32>} : memref<2x128xf32, #tpu.memory_space<vmem>>, vector<2x128xf32>,
    } else {
    }
    return
  }
  func.func @transform_0(%arg0: i32) -> (i32, i32) {
    %c0_i32 = arith.constant 0 : i32
    %c0_i32_0 = arith.constant 0 : i32
    %c0_i32_1 = arith.constant 0 : i32
    return %c0_i32, %c0_i32_0 : i32, i32
  }
  func.func @transform_1(%arg0: i32) -> (i32, i32) {
    %c0_i32 = arith.constant 0 : i32
    %c0_i32_0 = arith.constant 0 : i32
    %c0_i32_1 = arith.constant 0 : i32
    return %c0_i32, %c0_i32_0 : i32, i32
  }
  func.func @transform_2(%arg0: i32) -> (i32, i32) {
    %c0_i32 = arith.constant 0 : i32
    %c0_i32_0 = arith.constant 0 : i32
    %c0_i32_1 = arith.constant 0 : i32
    return %c0_i32, %c0_i32_0 : i32, i32
  }
  func.func @transform_3(%arg0: i32) -> (i32, i32) {
    %c0_i32 = arith.constant 0 : i32
    %c0_i32_0 = arith.constant 0 : i32
    %c0_i32_1 = arith.constant 0 : i32
    return %c0_i32, %c0_i32_0 : i32, i32
  }
  func.func @transform_4(%arg0: i32) -> (i32, i32) {
    %c0_i32 = arith.constant 0 : i32
    %c0_i32_0 = arith.constant 0 : i32
    %c0_i32_1 = arith.constant 0 : i32
    return %c0_i32, %c0_i32_0 : i32, i32
  }
  func.func @transform_5(%arg0: i32) -> (i32, i32, i32) {
    %c0_i32 = arith.constant 0 : i32
    %c0_i32_0 = arith.constant 0 : i32
    %c0_i32_1 = arith.constant 0 : i32
    return %arg0, %c0_i32, %c0_i32_0 : i32, i32, i32
  }
  func.func @transform_6(%arg0: i32) -> (i32, i32, i32) {
    %c0_i32 = arith.constant 0 : i32
    %c0_i32_0 = arith.constant 0 : i32
    %c0_i32_1 = arith.constant 0 : i32
    return %arg0, %c0_i32, %c0_i32_0 : i32, i32, i32
  }
  func.func @transform_7(%arg0: i32) -> (i32, i32, i32) {
    %c0_i32 = arith.constant 0 : i32
    %c0_i32_0 = arith.constant 0 : i32
    %c0_i32_1 = arith.constant 0 : i32
    return %arg0, %c0_i32, %c0_i32_0 : i32, i32, i32
  }
  func.func @transform_8(%arg0: i32) -> (i32, i32, i32) {
    %c0_i32 = arith.constant 0 : i32
    %c0_i32_0 = arith.constant 0 : i32
    %c0_i32_1 = arith.constant 0 : i32
    return %arg0, %c0_i32, %c0_i32_0 : i32, i32, i32
  }
  func.func @transform_9(%arg0: i32) -> (i32, i32, i32) {
    %c0_i32 = arith.constant 0 : i32
    %c0_i32_0 = arith.constant 0 : i32
    %c0_i32_1 = arith.constant 0 : i32
    return %arg0, %c0_i32, %c0_i32_0 : i32, i32, i32
  }
  func.func @transform_10(%arg0: i32) -> (i32, i32, i32) {
    %c0_i32 = arith.constant 0 : i32
    %c0_i32_0 = arith.constant 0 : i32
    %c0_i32_1 = arith.constant 0 : i32
    return %arg0, %c0_i32, %c0_i32_0 : i32, i32, i32
  }
  func.func @transform_11(%arg0: i32) -> (i32, i32, i32) {
    %c0_i32 = arith.constant 0 : i32
    %c0_i32_0 = arith.constant 0 : i32
    %c0_i32_1 = arith.constant 0 : i32
    return %arg0, %c0_i32, %c0_i32_0 : i32, i32, i32
  }
  func.func @transform_12(%arg0: i32) -> (i32, i32, i32) {
    %c0_i32 = arith.constant 0 : i32
    %c0_i32_0 = arith.constant 0 : i32
    %c0_i32_1 = arith.constant 0 : i32
    return %arg0, %c0_i32, %c0_i32_0 : i32, i32, i32
  }
  func.func @transform_13(%arg0: i32) -> (i32, i32, i32) {
    %c0_i32 = arith.constant 0 : i32
    %c0_i32_0 = arith.constant 0 : i32
    %c0_i32_1 = arith.constant 0 : i32
    return %arg0, %c0_i32, %c0_i32_0 : i32, i32, i32
  }
  func.func @transform_14(%arg0: i32) -> (i32, i32, i32) {
    %c0_i32 = arith.constant 0 : i32
    %c0_i32_0 = arith.constant 0 : i32
    %c0_i32_1 = arith.constant 0 : i32
    return %arg0, %c0_i32, %c0_i32_0 : i32, i32, i32
  }
  func.func @transform_15(%arg0: i32) -> (i32, i32, i32) {
    %c0_i32 = arith.constant 0 : i32
    %c0_i32_0 = arith.constant 0 : i32
    %c0_i32_1 = arith.constant 0 : i32
    return %arg0, %c0_i32, %c0_i32_0 : i32, i32, i32
  }
  func.func @transform_16(%arg0: i32) -> (i32, i32, i32) {
    %c0_i32 = arith.constant 0 : i32
    %c0_i32_0 = arith.constant 0 : i32
    %c0_i32_1 = arith.constant 0 : i32
    return %arg0, %c0_i32, %c0_i32_0 : i32, i32, i32
  }
  func.func @transform_17(%arg0: i32) -> (i32, i32) {
    %c0_i32 = arith.constant 0 : i32
    %c0_i32_0 = arith.constant 0 : i32
    %c0_i32_1 = arith.constant 0 : i32
    return %c0_i32, %c0_i32_0 : i32, i32
  }
  func.func @transform_18(%arg0: i32) -> (i32, i32) {
    %c0_i32 = arith.constant 0 : i32
    %c0_i32_0 = arith.constant 0 : i32
    %c0_i32_1 = arith.constant 0 : i32
    return %c0_i32, %c0_i32_0 : i32, i32
  }
  func.func @transform_19(%arg0: i32) -> (i32, i32) {
    %c0_i32 = arith.constant 0 : i32
    %c0_i32_0 = arith.constant 0 : i32
    %c0_i32_1 = arith.constant 0 : i32
    return %c0_i32, %c0_i32_0 : i32, i32
  }
}

</mosaic_0001>

<bundles_post_ra>
// kernel: mul.10
= control target key start
LH: loop header
LB: loop body
LE: loop exit
PB: predicated region body
PF: predicated region fallthrough
CT: control target
= control target key end

     0   :  { %vm7_vm0 = vcmask 64512   ;;  %vm13_vm1 = vcmask 130112   ;;  %s39_s0 = inlined_call_operand.vmem [shape: f32[2,8], index: 0, kind: input, shape index: {}]   ;;  %s40_s1 = inlined_call_operand.vmem [shape: f32[16], index: 1, kind: output, shape index: {}]  }
   0x1   :  { %v4_v0 = vld [vmem:[%s39_s0] sm:$0x3]  ;;  %s22_s0 = smov 8  }
   0x2   :  { %5 = vst [vmem:[#allocation1] sm:$0x3] %v4_v0 }
   0x9   :  { %v10_v1 = vld [vmem:[#allocation1 + $0x1] sm:$0x1]   ;;  %v6_v2 = vld [vmem:[#allocation1] sm:$0x1]  }
   0xa   :  { %11 = vrot.lane.b32.xlu0 %v10_v1, %s22_s0  ;;  %8 = vst.msk [vmem:[#allocation0] sm:$0x1] %vm7_vm0, %v6_v2  }
  0x7c   :  { %v12_v3 = vpop.permute.xlu0 %11  }
  0x7d   :  { %14 = vst.msk [vmem:[#allocation0] sm:$0x1] %vm13_vm1, %v12_v3  }
  0x84   :  { %v18_v4 = vld [vmem:[#allocation0] sm:$0x1] }
  0x85   :  { %20 = vst [vmem:[%s40_s1] sm:$0x1] %v18_v4 }

// kernel: behrt_forward.1
= control target key start
LH: loop header
LB: loop body
LE: loop exit
PB: predicated region body
PF: predicated region fallthrough
CT: control target
= control target key end

     0   :  { %s2953_s0 = inlined_call_operand.vmem [shape: bf16[16,64], index: 0, kind: input, shape index: {}]   ;;  %s2954_s1 = inlined_call_operand.vmem [shape: f32[16,16], index: 1, kind: input, shape index: {}]   ;;  %s2955_s2 = inlined_call_operand.vmem [shape: f32[2,64], index: 2, kind: input, shape index: {}]   ;;  %s2956_s3 = inlined_call_operand.vmem [shape: f32[1,64], index: 3, kind: input, shape index: {}]   ;;  %s2957_s4 = inlined_call_operand.vmem [shape: f32[1,64], index: 4, kind: input, shape index: {}]   ;;  %s2958_s5 = inlined_call_operand.vmem [shape: bf16[2,64,384], index: 5, kind: input, shape index: {}]   ;;  %s2959_s6 = inlined_call_operand.vmem [shape: f32[2,1,384], index: 6, kind: input, shape index: {}]   ;;  %s2960_s7 = inlined_call_operand.vmem [shape: bf16[2,64,64], index: 7, kind: input, shape index: {}]   ;;  %s2961_s8 = inlined_call_operand.vmem [shape: f32[2,1,64], index: 8, kind: input, shape index: {}]   ;;  %s2962_s9 = inlined_call_operand.vmem [shape: f32[2,1,64], index: 9, kind: input, shape index: {}]   ;;  %s2963_s10 = inlined_call_operand.vmem [shape: f32[2,1,64], index: 10, kind: input, shape index: {}]   ;;  %s2964_s11 = inlined_call_operand.vmem [shape: bf16[2,64,128], index: 11, kind: input, shape index: {}]   ;;  %s2965_s12 = inlined_call_operand.vmem [shape: f32[2,1,128], index: 12, kind: input, shape index: {}]   ;;  %s2966_s13 = inlined_call_operand.vmem [shape: bf16[2,128,64], index: 13, kind: input, shape index: {}]   ;;  %s2967_s14 = inlined_call_operand.vmem [shape: f32[2,1,64], index: 14, kind: input, shape index: {}]   ;;  %s2968_s15 = inlined_call_operand.vmem [shape: f32[2,1,64], index: 15, kind: input, shape index: {}]   ;;  %s2969_s16 = inlined_call_operand.vmem [shape: f32[2,1,64], index: 16, kind: input, shape index: {}]   ;;  %s2970_s17 = inlined_call_operand.vmem [shape: bf16[64,128], index: 17, kind: input, shape index: {}]   ;;  %s2971_s18 = inlined_call_operand.vmem [shape: f32[1,128], index: 18, kind: input, shape index: {}]   ;;  %s2972_s19 = inlined_call_operand.vmem [shape: f32[2,128], index: 19, kind: output, shape index: {}]  }
   0x1   :  { %2977 = sst [smem:[#allocation5_spill]] %s2953_s0  ;;  %s2633_s0 = smov 0  }
   0x2   :  { %2978 = sst [smem:[#allocation6_spill]] %s2954_s1 }
   0x3   :  { %2979 = sst [smem:[#allocation7_spill]] %s2955_s2 }
   0x4   :  { %2980 = sst [smem:[#allocation8_spill]] %s2956_s3 }
   0x5   :  { %2981 = sst [smem:[#allocation9_spill]] %s2957_s4 }
   0x6   :  { %2982 = sst [smem:[#allocation10_spill]] %s2958_s5 }
   0x7   :  { %2983 = sst [smem:[#allocation11_spill]] %s2960_s7 }
   0x8   :  { %2984 = sst [smem:[#allocation12_spill]] %s2970_s17 }
   0x9   :  { %2985 = sst [smem:[#allocation13_spill]] %s2971_s18 }
   0xa   :  { %2986 = sst [smem:[#allocation14_spill]] %s2972_s19 }
   0xb LB: > { %2987 = sst [smem:[#allocation3_spill]] %s2520_s0  ;;  %s2639_s30 = sadd.s32 4294967295, %s2520_s0   ;;  %s2520_s0 = sphi %s2633_s0, %s29_s0  }
   0xc   : > { %p2159_p0 = scmp.ge.s32.totalorder %s2520_s0, 1  ;;  %p627_p1 = scmp.lt.s32.totalorder %s2520_s0, 3 }
   0xe   : > { %p628_p2 = pnand %p2159_p0, %p627_p1 }
  0x10   : > { %631 = sbr.rel (%p628_p2) target bundleno = 3129 (0xc39), region = 96 }
  0x17   : > { %p718_p3 = scmp.lt.s32.totalorder %s2639_s30, 1  ;;  %s2988_s7 = sld [smem:[#allocation11_spill]] }
  0x18   : > { %s2990_s5 = sld [smem:[#allocation10_spill]]  ;;  %p2167_p4 = scmp.ne.s32.totalorder %s2639_s30, 0 }
  0x19   : > { %s2645_s20 = scalar_select %p718_p3, %s2639_s30, 1 }
  0x1a   : > { %s2991_s0 = sld [smem:[#allocation5_spill]] (!%p2167_p4)  ;;  %vm774_vm0 = vcmask (!%p2167_p4), 523264   ;;  %s2993_s23 = sld [smem:[#allocation9_spill]] (!%p2167_p4) }
  0x1b   : > { %s2394_s21 = smul.u32 96, %s2645_s20  ;;  %s2226_s1 = sshll.u32 %s2645_s20, 5 }
  0x1c   : > { %s2395_s22 = smul.u32 3, %s2645_s20  ;;  %s2680_s3 = scalar_lea.vmem %s2964_s11, %s2226_s1 }
  0x1d   : > { %s2653_s24 = scalar_lea.vmem %s2988_s7, %s2226_s1  ;;  %s748_s29 = scalar_lea.vmem %s2965_s12, %s2645_s20 }
  0x1e   : > { %2989 = sst [smem:[#allocation4_spill]] %s2653_s24  ;;  %s2658_s26 = scalar_lea.vmem %s2990_s5, %s2394_s21 }
  0x1f   : > { %s2667_s18 = scalar_lea.vmem %s2959_s6, %s2395_s22  ;;  %s2228_s19 = sshll.u32 %s2645_s20, 6 }
  0x20   : > { %s2690_s5 = scalar_lea.vmem %s2966_s13, %s2228_s19  ;;  %s756_s7 = scalar_lea.vmem %s2967_s14, %s2645_s20  ;;  %v2230_v0 = vld [vmem:[%s2991_s0] sm:$0xff] (!%p2167_p4)  }
  0x21   : > { %s759_s25 = scalar_lea.vmem %s2968_s15, %s2645_s20  ;;  %s762_s2 = scalar_lea.vmem %s2969_s16, %s2645_s20  ;;  %v2231_v1 = vunpack.c.l.bf16 (!%p2167_p4), %v2230_v0  ;;  %v2232_v2 = vunpack.c.h.bf16 (!%p2167_p4), %v2230_v0  ;;  %v2169_v24 = vld [vmem:[%s2993_s23] ss:$0 sm:$0xff] (!%p2167_p4) }
  0x22   : > { %767 = sbr.rel (%p2167_p4) target bundleno = 353 (0x161), region = 100  ;;  %s2992_s22 = sld [smem:[#allocation8_spill]] (!%p2167_p4) }
  0x23   : > { %v775_v3 = vsel (!%p2167_p4), %vm774_vm0, %v2231_v1, 0.0  ;;  %v778_v4 = vsel (!%p2167_p4), %vm774_vm0, %v2232_v2, 0.0 }
  0x24   : > { %776 = vadd.xlane.f32.xlu0 (!%p2167_p4), %v775_v3 }
  0x28   : > { %779 = vadd.xlane.f32.xlu0 (!%p2167_p4), %v778_v4  ;;  %v2168_v22 = vld [vmem:[%s2992_s22] ss:$0 sm:$0xff] (!%p2167_p4) }
  0xb1   : > { %v777_v5 = vpop.xlane.xlu0 %776 }
  0xb2   : > { %v782_v6 = vmul.f32 0.015625, %v777_v5 }
  0xb4   : > { %v784_v7 = vsub.f32 %v2231_v1, %v782_v6 }
  0xb5   : > { %v780_v8 = vpop.xlane.xlu0 %779 }
  0xb6   : > { %v783_v9 = vmul.f32 0.015625, %v780_v8  ;;  %v786_v10 = vmul.f32 %v784_v7, %v784_v7 }
  0xb8   : > { %v785_v11 = vsub.f32 %v2232_v2, %v783_v9  ;;  %v788_v12 = vsel %vm774_vm0, %v786_v10, 0.0 }
  0xb9   : > { %789 = vadd.xlane.f32.xlu1 %v788_v12 }
  0xba   : > { %v787_v13 = vmul.f32 %v785_v11, %v785_v11 }
  0xbc   : > { %v791_v14 = vsel %vm774_vm0, %v787_v13, 0.0 }
  0xbd   : > { %792 = vadd.xlane.f32.xlu1 %v791_v14 }
 0x146   : > { %v790_v15 = vpop.xlane.xlu1 %789 }
 0x147   : > { %v794_v16 = vmul.f32 0.015625, %v790_v15 }
 0x149   : > { %v796_v17 = vadd.f32 1e-12, %v794_v16 }
 0x14a   : > { %v793_v18 = vpop.xlane.xlu1 %792 }
 0x14b   : > { %2415 = vrsqrt.f32 %v796_v17  ;;  %v795_v19 = vmul.f32 0.015625, %v793_v18 }
 0x14d   : > { %v797_v20 = vadd.f32 1e-12, %v795_v19 }
 0x14f   : > { %2417 = vrsqrt.f32 %v797_v20 }
 0x155   : > { %v2416_v21 = vpop.eup %2415 }
 0x156   : > { %v800_v23 = vmul.f32 %v2416_v21, %v784_v7 }
 0x158   : > { %v808_v25 = vmul.f32 %v2168_v22, %v800_v23 }
 0x159   : > { %v2418_v26 = vpop.eup %2417 }
 0x15a   : > { %v816_v27 = vadd.f32 %v2169_v24, %v808_v25  ;;  %v801_v28 = vmul.f32 %v2418_v26, %v785_v11 }
 0x15c   : > { %818 = vst.msk [vmem:[#allocation2] sm:$0xff] %vm774_vm0, %v816_v27  ;;  %v809_v29 = vmul.f32 %v2168_v22, %v801_v28 }
 0x15e   : > { %v817_v30 = vadd.f32 %v2169_v24, %v809_v29 }
 0x160   : > { %819 = vst.msk [vmem:[#allocation2 + $0x8] sm:$0xff] %vm774_vm0, %v817_v30 }
 0x161 PF: > { %v2434_v31 = vld [vmem:[%s2658_s26 + $0x4] ss:$12 sps:$4 sm:$0xff]   ;;  %v2436_v32 = vld [vmem:[%s2658_s26] ss:$12 sps:$4 sm:$0xff]   ;;  %v2522_v33 = vmov 0   ;;  %vm922_vm1 = vcmask 523264   ;;  %v843_v44 = vlaneseq  ;;  %s2998_s24 = scalar_lea.vmem %s2963_s10, %s2645_s20 }
 0x162   : > { %958 = vmatprep.mubr.bf16.mxu1 %v2522_v33  ;;  %926 = vmatprep.subr.bf16.mxu1 %v2434_v31  ;;  %v2437_v34 = vld [vmem:[%s2658_s26 + $0x1c] ss:$12 sps:$4 sm:$0xff]   ;;  %v2439_v35 = vld [vmem:[%s2658_s26 + $0x18] ss:$12 sps:$4 sm:$0xff]   ;;  %v2440_v36 = vld [vmem:[%s2658_s26 + $0x34] ss:$12 sps:$4 sm:$0xff]  }
 0x163   : > { %927 = vmatpush1.bf16.msra.mxu1 %v2436_v32  ;;  %v2442_v37 = vld [vmem:[%s2658_s26 + $0x30] ss:$12 sps:$4 sm:$0xff]   ;;  %v2443_v38 = vld [vmem:[%s2658_s26 + $0x4c] ss:$12 sps:$4 sm:$0xff]   ;;  %v2445_v39 = vld [vmem:[%s2658_s26 + $0x48] ss:$12 sps:$4 sm:$0xff]  }
 0x164   : > { %928 = vmatprep.subr.bf16.mxu1 %v2437_v34  ;;  %v2728_v40 = vld [vmem:[#allocation2] sm:$0xff]  ;;  %v2523_v43 = vmov 0.0   ;;  %vm2524_vm2 = vmmov 0   ;;  %v2741_v45 = vshrl.u32 %v843_v44, 7  ;;  %vm1015_vm3 = vcmask 130048   ;;  %s2526_s1 = smov 112  }
 0x165   : > { %2290 = vmatprep.subr.bf16.mxu0 %v2523_v43  ;;  %2292 = vmatprep.mubr.msk.bf16.mxu0 %vm2524_vm2, %v2523_v43  ;;  %v2745_v47 = vld [vmem:[%s2667_s18] sm:$0x7]  ;;  %s2525_s18 = smov 96   ;;  %s2527_s21 = smov 80   ;;  %v2446_v0 = vld [vmem:[%s2658_s26 + $0x8] ss:$12 sps:$4 sm:$0xff]  }
 0x166   : > { %v845_v46 = vsub.s32 0, %v2741_v45  ;;  %v849_v48 = vsub.s32 1, %v2741_v45  ;;  %v2447_v1 = vld [vmem:[%s2658_s26 + $0x20] ss:$12 sps:$4 sm:$0xff]   ;;  %v2448_v2 = vld [vmem:[%s2658_s26 + $0x38] ss:$12 sps:$4 sm:$0xff]  }
 0x167   : > { %929 = vmatpush1.bf16.msra.mxu1 %v2439_v35  ;;  %v2730_v41 = vld [vmem:[#allocation2 + $0x8] sm:$0xff]  ;;  %v2449_v3 = vld [vmem:[%s2658_s26 + $0x50] ss:$12 sps:$4 sm:$0xff]   ;;  %s2994_s28 = sld [smem:[#allocation6_spill]]  ;;  %v853_v23 = vsub.s32 2, %v2741_v45  ;;  %s2995_s19 = sld [smem:[#allocation4_spill]] }
 0x168   : > { %930 = vmatprep.subr.bf16.mxu1 %v2440_v36  ;;  %v840_v42 = vpack.c.bf16 %v2730_v41, %v2728_v40  ;;  %v846_v49 = vrot.slane %v2745_v47, %v845_v46  ;;  %v850_v51 = vrot.slane %v2745_v47, %v849_v48  ;;  %s2528_s22 = smov 16   ;;  %s2529_s4 = smov 32   ;;  %vm1522_vm4 = vcmask 261120  }
 0x169   : > { %v854_v24 = vrot.slane %v2745_v47, %v853_v23  ;;  %s2530_s17 = smov 48   ;;  %vm1525_vm5 = vcmask 392192   ;;  %p2217_p5 = scmp.ne.s32.totalorder %s2639_s30, 1 }
 0x16a   : > { %vm2532_vm6 = vmmov (!%p2217_p5), 0   ;;  %vm1929_vm7 = vcmask (!%p2217_p5), 1040384   ;;  %s3000_s27 = sld [smem:[#allocation7_spill]] (!%p2217_p5) }
 0x16b   : > { %931 = vmatpush1.bf16.msra.mxu1 %v2442_v37 }
 0x16c   : > { %932 = vmatprep.subr.bf16.mxu1 %v2443_v38 }
 0x16d   : > { %v822_v13 = vld [vmem:[%s2994_s28] sm:$0xff]  ;;  %v823_v15 = vld [vmem:[%s2994_s28 + $0x8] sm:$0xff] }
 0x16f   : > { %933 = vmatpush1.bf16.msra.mxu1 %v2445_v39 }
 0x170   : > { %2278 = vmatprep.subr.bf16.mxu1 %v2523_v43 }
 0x172   : > { %2182 = vmatmul.mubr.msk.bf16.vlgmr.msra.gmra.mrb[0].mxu1 %vm922_vm1, %v840_v42 }
 0x173   : > { %2286 = vmatprep.mubr.msk.bf16.mxu1 %vm2524_vm2, %v2523_v43  ;;  %2279 = vmatpush3.bf16.msra.mxu1 %v2446_v0 }
 0x174   : > { %2280 = vmatprep.subr.bf16.mxu1 %v2523_v43 }
 0x177   : > { %2281 = vmatpush3.bf16.msra.mxu1 %v2447_v1 }
 0x178   : > { %2282 = vmatprep.subr.bf16.mxu1 %v2523_v43 }
 0x17b   : > { %2283 = vmatpush3.bf16.msra.mxu1 %v2448_v2 }
 0x17c   : > { %2284 = vmatprep.subr.bf16.mxu1 %v2523_v43 }
 0x17f   : > { %2285 = vmatpush3.bf16.msra.mxu1 %v2449_v3 }
 0x180   : > { %2296 = vmatprep.subr.bf16.mxu1 %v2523_v43 }
 0x182   : > { %2287 = vmatmul.mubr.msk.bf16.vlgmr.msra.gmra.mrb[4].mxu1 %vm922_vm1, %v840_v42 }
 0x183   : > { %2298 = vmatprep.mubr.msk.bf16.mxu1 %vm2524_vm2, %v2523_v43 }
 0x245   : > { %v960_v50 = vpop.f32.mrb[0].mxu1 }
 0x246   : > { %v961_v52 = vadd.f32 %v960_v50, %v846_v49  ;;  %v962_v53 = vpop.f32.mrb[1].mxu1 }
 0x247   : > { %v964_v54 = vpop.f32.mrb[2].mxu1  ;;  %v963_v57 = vadd.f32 %v962_v53, %v850_v51 }
 0x248   : > { %v965_v55 = vadd.f32 %v964_v54, %v846_v49  ;;  %v966_v56 = vpop.f32.mrb[3].mxu1  ;;  %v1010_v59 = vmul.f32 0.25, %v961_v52 }
 0x249   : > { %v967_v58 = vadd.f32 %v966_v56, %v850_v51 }
 0x24a   : > { %v1011_v60 = vmul.f32 0.25, %v965_v55 }
 0x24b   : > { %v1013_v61 = vpack.c.bf16 %v967_v58, %v963_v57 }
 0x24c   : > { %v1012_v62 = vpack.c.bf16 %v1011_v60, %v1010_v59 }
 0x24d   : > { %1256 = vrot.lane.b32.xlu1 %v1013_v61, %s2525_s18  ;;  %1134 = vrot.lane.b32.xlu0 %v1013_v61, %s2526_s1  ;;  %v1020_v63 = vsel %vm1015_vm3, %v1013_v61, 0 }
 0x24e   : > { %2291 = vmatpush3.bf16.xpose.msra.mxu0 %v1020_v63 }
 0x24f   : > { %2302 = vmatprep.subr.bf16.mxu0 %v2523_v43 }
 0x251   : > { %1254 = vrot.lane.b32.xlu1 %v1012_v62, %s2525_s18  ;;  %1131 = vrot.lane.b32.xlu0 %v1012_v62, %s2526_s1 }
 0x255   : > { %1375 = vrot.lane.b32.xlu1 %v1012_v62, %s2527_s21  ;;  %1377 = vrot.lane.b32.xlu0 %v1013_v61, %s2527_s21  ;;  %v1003_v25 = vpop.f32.mrb[4].mxu1 }
 0x256   : > { %2293 = vmatmul.mubr.msk.bf16.vlgmr.msra.gmra.mrb[0].mxu0 %vm1015_vm3, %v1012_v62  ;;  %v1004_v26 = vadd.f32 %v1003_v25, %v854_v24  ;;  %v2288_v27 = vpop.f32.mrb[5].mxu1 }
 0x257   : > { %2304 = vmatprep.mubr.msk.bf16.mxu0 %vm2524_vm2, %v2523_v43  ;;  %v1006_v28 = vpop.f32.mrb[6].mxu1 }
 0x258   : > { %v1007_v29 = vadd.f32 %v1006_v28, %v854_v24  ;;  %v2289_v30 = vpop.f32.mrb[7].mxu1 }
 0x25a   : > { %v2797_v31 = vpack.c.bf16 %v1007_v29, %v1004_v26 }
 0x25c   : > { %2297 = vmatpush3.bf16.msra.mxu1 %v2797_v31 }
 0x25d   : > { %2308 = vmatprep.subr.bf16.mxu1 %v2523_v43 }
 0x2bf   : > { %v1135_v4 = vpop.permute.xlu0 %1134  ;;  %v1257_v6 = vpop.permute.xlu1 %1256 }
 0x2c0   : > { %v1140_v5 = vsel %vm1015_vm3, %v1135_v4, 0  ;;  %v1262_v8 = vsel %vm1015_vm3, %v1257_v6, 0 }
 0x2c1   : > { %2303 = vmatpush3.bf16.xpose.msra.mxu0 %v1140_v5 }
 0x2c2   : > { %2314 = vmatprep.subr.bf16.mxu0 %v2523_v43 }
 0x2c3   : > { %v1132_v7 = vpop.permute.xlu0 %1131  ;;  %v1255_v10 = vpop.permute.xlu1 %1254 }
 0x2c7   : > { %v1378_v9 = vpop.permute.xlu0 %1377  ;;  %v1376_v12 = vpop.permute.xlu1 %1375 }
 0x2c8   : > { %2305 = vmatmul.mubr.msk.bf16.vlgmr.msra.gmra.mrb[4].mxu0 %vm1015_vm3, %v1132_v7  ;;  %v1383_v11 = vsel %vm1015_vm3, %v1378_v9, 0 }
 0x2c9   : > { %2315 = vmatpush3.bf16.xpose.msra.mxu0 %v1262_v8  ;;  %2316 = vmatprep.mubr.msk.bf16.mxu0 %vm2524_vm2, %v2523_v43 }
 0x2ca   : > { %2326 = vmatprep.subr.bf16.mxu0 %v2523_v43 }
 0x2d0   : > { %2317 = vmatmul.mubr.msk.bf16.vlgmr.msra.gmra.mrb[8].mxu0 %vm1015_vm3, %v1255_v10 }
 0x2d1   : > { %2327 = vmatpush3.bf16.xpose.msra.mxu0 %v1383_v11  ;;  %2328 = vmatprep.mubr.msk.bf16.mxu0 %vm2524_vm2, %v2523_v43 }
 0x2d2   : > { %2338 = vmatprep.subr.bf16.mxu0 %v2523_v43 }
 0x2d8   : > { %2329 = vmatmul.mubr.msk.bf16.vlgmr.msra.gmra.mrb[12].mxu0 %vm1015_vm3, %v1376_v12 }
 0x2d9   : > { %2346 = vmatprep.mubr.msk.bf16.mxu0 %vm2524_vm2, %v2523_v43 }
 0x329   : > { %v1056_v14 = vpop.f32.mrb[0].mxu0 }
 0x32a   : > { %v1057_v16 = vadd.f32 %v1056_v14, %v822_v13  ;;  %v2294_v17 = vpop.f32.mrb[1].mxu0 }
 0x32b   : > { %v1059_v18 = vpop.f32.mrb[2].mxu0 }
 0x32c   : > { %v1060_v19 = vadd.f32 %v1059_v18, %v823_v15  ;;  %v2295_v20 = vpop.f32.mrb[3].mxu0  ;;  %v1063_v21 = vsel %vm1015_vm3, %v1057_v16, -inf }
 0x32d   : > { %1064 = vmax.xlane.f32.xlu0 %v1063_v21 }
 0x32e   : > { %v1066_v22 = vsel %vm1015_vm3, %v1060_v19, -inf }
 0x32f   : > { %1067 = vmax.xlane.f32.xlu1 %v1066_v22 }
 0x39b   : > { %v1176_v32 = vpop.f32.mrb[4].mxu0 }
 0x39c   : > { %v1177_v33 = vadd.f32 %v1176_v32, %v822_v13  ;;  %v2306_v34 = vpop.f32.mrb[5].mxu0 }
 0x39d   : > { %v1179_v35 = vpop.f32.mrb[6].mxu0 }
 0x39e   : > { %v1180_v36 = vadd.f32 %v1179_v35, %v823_v15  ;;  %v2307_v37 = vpop.f32.mrb[7].mxu0  ;;  %v1183_v38 = vsel %vm1015_vm3, %v1177_v33, -inf }
 0x39f   : > { %1184 = vmax.xlane.f32.xlu0 %v1183_v38 }
 0x3a0   : > { %v1186_v39 = vsel %vm1015_vm3, %v1180_v36, -inf }
 0x3a3   : > { %1187 = vmax.xlane.f32.xlu0 %v1186_v39  ;;  %v1298_v42 = vpop.f32.mrb[8].mxu0 }
 0x3a4   : > { %v1299_v44 = vadd.f32 %v1298_v42, %v822_v13  ;;  %v2318_v45 = vpop.f32.mrb[9].mxu0 }
 0x3a5   : > { %v1301_v46 = vpop.f32.mrb[10].mxu0 }
 0x3a6   : > { %v1302_v47 = vadd.f32 %v1301_v46, %v823_v15  ;;  %v2319_v48 = vpop.f32.mrb[11].mxu0  ;;  %v1305_v49 = vsel %vm1015_vm3, %v1299_v44, -inf }
 0x3a7   : > { %1306 = vmax.xlane.f32.xlu1 %v1305_v49 }
 0x3a8   : > { %v1308_v50 = vsel %vm1015_vm3, %v1302_v47, -inf }
 0x3a9   : > { %1309 = vmax.xlane.f32.xlu0 %v1308_v50 }
 0x3ab   : > { %v1419_v51 = vpop.f32.mrb[12].mxu0 }
 0x3ac   : > { %v1420_v52 = vadd.f32 %v1419_v51, %v822_v13  ;;  %v2330_v53 = vpop.f32.mrb[13].mxu0 }
 0x3ad   : > { %v1422_v54 = vpop.f32.mrb[14].mxu0 }
 0x3ae   : > { %v1423_v55 = vadd.f32 %v1422_v54, %v823_v15  ;;  %v2331_v56 = vpop.f32.mrb[15].mxu0  ;;  %v1426_v57 = vsel %vm1015_vm3, %v1420_v52, -inf }
 0x3af   : > { %1427 = vmax.xlane.f32.xlu1 %v1426_v57 }
 0x3b0   : > { %v1429_v58 = vsel %vm1015_vm3, %v1423_v55, -inf }
 0x3b1   : > { %1430 = vmax.xlane.f32.xlu0 %v1429_v58 }
 0x3ba   : > { %v1065_v59 = vpop.xlane.xlu0 %1064 }
 0x3bb   : > { %v1069_v60 = vsub.f32 %v1057_v16, %v1065_v59 }
 0x3bc   : > { %v1068_v61 = vpop.xlane.xlu1 %1067 }
 0x3bd   : > { %v1071_v62 = vmul.f32 1.442695, %v1069_v60  ;;  %v1070_v63 = vsub.f32 %v1060_v19, %v1068_v61 }
 0x3bf   : > { %2466 = vpow2.f32 %v1071_v62  ;;  %v1073_v0 = vmul.f32 1.442695, %v1070_v63 }
 0x3c1   : > { %2468 = vpow2.f32 %v1073_v0 }
 0x3c9   : > { %v2467_v1 = vpop.eup %2466 }
 0x3ca   : > { %v1075_v2 = vsel %vm1015_vm3, %v2467_v1, 0.0 }
 0x3cb   : > { %v2469_v3 = vpop.eup %2468  ;;  %1076 = vadd.xlane.f32.xlu1 %v1075_v2 }
 0x3cc   : > { %v1078_v4 = vsel %vm1015_vm3, %v2469_v3, 0.0 }
 0x3cd   : > { %1079 = vadd.xlane.f32.xlu0 %v1078_v4 }
 0x3dc   : > { %1207 = vrot.lane.b32.xlu1 %v2797_v31, %s2526_s1  ;;  %s2996_s1 = scalar_lea.vmem %s2961_s8, %s2645_s20 }
 0x42c   : > { %v1185_v5 = vpop.xlane.xlu0 %1184 }
 0x42d   : > { %v1189_v6 = vsub.f32 %v1177_v33, %v1185_v5 }
 0x42f   : > { %v1191_v7 = vmul.f32 1.442695, %v1189_v6 }
 0x430   : > { %v1188_v8 = vpop.xlane.xlu0 %1187 }
 0x431   : > { %2470 = vpow2.f32 %v1191_v7  ;;  %v1190_v9 = vsub.f32 %v1180_v36, %v1188_v8 }
 0x433   : > { %v1193_v10 = vmul.f32 1.442695, %v1190_v9  ;;  %v2450_v9 = vld [vmem:[%s2995_s19] sm:$0xff]  }
 0x434   : > { %v1307_v11 = vpop.xlane.xlu1 %1306  ;;  %2339 = vmatpush3.bf16.msra.mxu0 %v2450_v9 }
 0x435   : > { %2472 = vpow2.f32 %v1193_v10  ;;  %v1311_v12 = vsub.f32 %v1299_v44, %v1307_v11  ;;  %2340 = vmatprep.subr.bf16.mxu0 %v2523_v43 }
 0x436   : > { %v1310_v13 = vpop.xlane.xlu0 %1309 }
 0x437   : > { %v1313_v14 = vmul.f32 1.442695, %v1311_v12  ;;  %v1312_v15 = vsub.f32 %v1302_v47, %v1310_v13  ;;  %v2451_v12 = vld [vmem:[%s2995_s19 + $0x8] sm:$0xff]  }
 0x438   : > { %2341 = vmatpush3.bf16.msra.mxu0 %v2451_v12 }
 0x439   : > { %2474 = vpow2.f32 %v1313_v14  ;;  %v1315_v16 = vmul.f32 1.442695, %v1312_v15  ;;  %2342 = vmatprep.subr.bf16.mxu0 %v2523_v43 }
 0x43b   : > { %v2471_v17 = vpop.eup %2470  ;;  %2476 = vpow2.f32 %v1315_v16  ;;  %v2452_v16 = vld [vmem:[%s2995_s19 + $0x10] sm:$0xff]  }
 0x43c   : > { %v1428_v18 = vpop.xlane.xlu1 %1427  ;;  %v1195_v19 = vsel %vm1015_vm3, %v2471_v17, 0.0  ;;  %2343 = vmatpush3.bf16.msra.mxu0 %v2452_v16 }
 0x43d   : > { %v1432_v20 = vsub.f32 %v1420_v52, %v1428_v18  ;;  %1196 = vadd.xlane.f32.xlu1 %v1195_v19  ;;  %2344 = vmatprep.subr.bf16.mxu0 %v2523_v43  ;;  %v2453_v19 = vld [vmem:[%s2995_s19 + $0x18] sm:$0xff]  }
 0x43e   : > { %v1431_v21 = vpop.xlane.xlu0 %1430 }
 0x43f   : > { %v2473_v22 = vpop.eup %2472  ;;  %v1434_v23 = vmul.f32 1.442695, %v1432_v20  ;;  %v1433_v24 = vsub.f32 %v1423_v55, %v1431_v21 }
 0x440   : > { %v1198_v25 = vsel %vm1015_vm3, %v2473_v22, 0.0  ;;  %2345 = vmatpush3.bf16.msra.mxu0 %v2453_v19 }
 0x441   : > { %2478 = vpow2.f32 %v1434_v23  ;;  %v1436_v26 = vmul.f32 1.442695, %v1433_v24  ;;  %1199 = vadd.xlane.f32.xlu0 %v1198_v25  ;;  %2362 = vmatprep.subr.bf16.mxu0 %v2523_v43 }
 0x443   : > { %v2475_v27 = vpop.eup %2474  ;;  %2480 = vpow2.f32 %v1436_v26 }
 0x444   : > { %v1317_v28 = vsel %vm1015_vm3, %v2475_v27, 0.0 }
 0x445   : > { %v2477_v29 = vpop.eup %2476  ;;  %1318 = vadd.xlane.f32.xlu1 %v1317_v28 }
 0x446   : > { %v1320_v30 = vsel %vm1015_vm3, %v2477_v29, 0.0 }
 0x447   : > { %1321 = vadd.xlane.f32.xlu0 %v1320_v30 }
 0x44b   : > { %v2479_v32 = vpop.eup %2478 }
 0x44c   : > { %v1438_v33 = vsel %vm1015_vm3, %v2479_v32, 0.0 }
 0x44d   : > { %v2481_v34 = vpop.eup %2480  ;;  %1439 = vadd.xlane.f32.xlu1 %v1438_v33 }
 0x44e   : > { %v1441_v35 = vsel %vm1015_vm3, %v2481_v34, 0.0 }
 0x44f   : > { %1442 = vadd.xlane.f32.xlu0 %v1441_v35 }
 0x458   : > { %v1077_v36 = vpop.xlane.xlu1 %1076 }
 0x459   : > { %2482 = vrcp.f32 %v1077_v36 }
 0x45a   : > { %v1080_v37 = vpop.xlane.xlu0 %1079 }
 0x45b   : > { %2484 = vrcp.f32 %v1080_v37 }
 0x45c   : > { %v1208_v46 = vpop.permute.xlu1 %1207 }
 0x45e   : > { %1449 = vrot.lane.b32.xlu1 %v2797_v31, %s2527_s21 }
 0x463   : > { %v2483_v38 = vpop.eup %2482 }
 0x464   : > { %v1083_v42 = vmul.f32 %v2483_v38, %v2467_v1 }
 0x465   : > { %v2485_v39 = vpop.eup %2484  ;;  %1328 = vrot.lane.b32.xlu0 %v2797_v31, %s2525_s18 }
 0x466   : > { %v1084_v44 = vmul.f32 %v2485_v39, %v2469_v3 }
 0x468   : > { %v1085_v45 = vpack.c.bf16 %v1084_v44, %v1083_v42 }
 0x46a   : > { %2299 = vmatmul.mubr.msk.bf16.vlgmr.msra.gmra.mrb[8].mxu1 %vm1015_vm3, %v1085_v45 }
 0x46b   : > { %2309 = vmatpush3.bf16.msra.mxu1 %v1208_v46  ;;  %2310 = vmatprep.mubr.msk.bf16.mxu1 %vm2524_vm2, %v2523_v43 }
 0x46c   : > { %2320 = vmatprep.subr.bf16.mxu1 %v2523_v43 }
 0x4ca   : > { %v1197_v47 = vpop.xlane.xlu1 %1196 }
 0x4cb   : > { %2486 = vrcp.f32 %v1197_v47 }
 0x4ce   : > { %v1200_v48 = vpop.xlane.xlu0 %1199 }
 0x4cf   : > { %2488 = vrcp.f32 %v1200_v48  ;;  %v2192_v48 = vld [vmem:[%s2996_s1] ss:$0 sm:$0xff]  ;;  %s2999_s1 = sld [smem:[#allocation12_spill]] (!%p2217_p5) }
 0x4d2   : > { %v1319_v49 = vpop.xlane.xlu1 %1318 }
 0x4d3   : > { %2490 = vrcp.f32 %v1319_v49 }
 0x4d4   : > { %v1322_v50 = vpop.xlane.xlu0 %1321 }
 0x4d5   : > { %2492 = vrcp.f32 %v1322_v50  ;;  %v2487_v31 = vpop.eup %2486 }
 0x4d6   : > { %v1203_v52 = vmul.f32 %v2487_v31, %v2471_v17 }
 0x4d9   : > { %v2489_v51 = vpop.eup %2488 }
 0x4da   : > { %v1204_v53 = vmul.f32 %v2489_v51, %v2473_v22  ;;  %v1440_v54 = vpop.xlane.xlu1 %1439 }
 0x4db   : > { %2494 = vrcp.f32 %v1440_v54 }
 0x4dc   : > { %v1443_v55 = vpop.xlane.xlu0 %1442  ;;  %v1205_v56 = vpack.c.bf16 %v1204_v53, %v1203_v52 }
 0x4dd   : > { %2496 = vrcp.f32 %v1443_v55  ;;  %v2491_v57 = vpop.eup %2490 }
 0x4de   : > { %2311 = vmatmul.mubr.msk.bf16.vlgmr.msra.gmra.mrb[12].mxu1 %vm1015_vm3, %v1205_v56  ;;  %v1325_v61 = vmul.f32 %v2491_v57, %v2475_v27  ;;  %v1450_v0 = vpop.permute.xlu1 %1449 }
 0x4df   : > { %v2493_v58 = vpop.eup %2492  ;;  %2322 = vmatprep.mubr.msk.bf16.mxu1 %vm2524_vm2, %v2523_v43 }
 0x4e0   : > { %v1326_v59 = vmul.f32 %v2493_v58, %v2477_v29  ;;  %v1329_v60 = vpop.permute.xlu0 %1328 }
 0x4e1   : > { %2321 = vmatpush3.bf16.msra.mxu1 %v1329_v60 }
 0x4e2   : > { %2332 = vmatprep.subr.bf16.mxu1 %v2523_v43  ;;  %v1327_v62 = vpack.c.bf16 %v1326_v59, %v1325_v61 }
 0x4e5   : > { %v2495_v63 = vpop.eup %2494 }
 0x4e6   : > { %2323 = vmatmul.mubr.msk.bf16.vlgmr.msra.gmra.mrb[16].mxu1 %vm1015_vm3, %v1327_v62  ;;  %v1446_v3 = vmul.f32 %v2495_v63, %v2479_v32 }
 0x4e7   : > { %v2497_v1 = vpop.eup %2496  ;;  %2333 = vmatpush3.bf16.msra.mxu1 %v1450_v0  ;;  %2334 = vmatprep.mubr.msk.bf16.mxu1 %vm2524_vm2, %v2523_v43 }
 0x4e8   : > { %v1447_v2 = vmul.f32 %v2497_v1, %v2481_v34  ;;  %2350 = vmatprep.subr.bf16.mxu1 %v2523_v43 }
 0x4ea   : > { %v1448_v4 = vpack.c.bf16 %v1447_v2, %v1446_v3  ;;  %v2454_v2 = vld [vmem:[%s2680_s3] sm:$0xff]   ;;  %v2455_v3 = vld [vmem:[%s2680_s3 + $0x8] sm:$0xff]  }
 0x4ee   : > { %2335 = vmatmul.mubr.msk.bf16.vlgmr.msra.gmra.mrb[20].mxu1 %vm1015_vm3, %v1448_v4  ;;  %v2456_v4 = vld [vmem:[%s2680_s3 + $0x10] sm:$0xff]  }
 0x4ef   : > { %2358 = vmatprep.mubr.msk.bf16.mxu1 %vm2524_vm2, %v2523_v43  ;;  %2351 = vmatpush3.bf16.msra.mxu1 %v2454_v2 }
 0x4f0   : > { %2352 = vmatprep.subr.bf16.mxu1 %v2523_v43 }
 0x4f3   : > { %2353 = vmatpush3.bf16.msra.mxu1 %v2455_v3 }
 0x4f4   : > { %2354 = vmatprep.subr.bf16.mxu1 %v2523_v43 }
 0x4f7   : > { %2355 = vmatpush3.bf16.msra.mxu1 %v2456_v4 }
 0x4f8   : > { %2356 = vmatprep.subr.bf16.mxu1 %v2523_v43 }
 0x53d   : > { %v1123_v5 = vpop.f32.mrb[8].mxu1 }
 0x53e   : > { %v2300_v6 = vpop.f32.mrb[9].mxu1 }
 0x53f   : > { %v1126_v7 = vpop.f32.mrb[10].mxu1 }
 0x540   : > { %v2301_v8 = vpop.f32.mrb[11].mxu1 }
 0x5b1   : > { %v1247_v10 = vpop.f32.mrb[12].mxu1 }
 0x5b2   : > { %v2312_v11 = vpop.f32.mrb[13].mxu1 }
 0x5b3   : > { %v1250_v13 = vpop.f32.mrb[14].mxu1 }
 0x5b4   : > { %v2419_v14 = vpack.i.bf16 %v1250_v13, %v1247_v10  ;;  %v2313_v15 = vpop.f32.mrb[15].mxu1 }
 0x5b6   : > { %2420 = vrot.lane.b32.xlu1 %v2419_v14, %s2528_s22 }
 0x5b9   : > { %v1368_v17 = vpop.f32.mrb[16].mxu1 }
 0x5ba   : > { %v2324_v18 = vpop.f32.mrb[17].mxu1 }
 0x5bb   : > { %v1371_v20 = vpop.f32.mrb[18].mxu1  ;;  %v2199_v18 = vld [vmem:[%s2998_s24] ss:$0 sm:$0xff] }
 0x5bc   : > { %v2424_v21 = vpack.i.bf16 %v1371_v20, %v1368_v17  ;;  %v2325_v22 = vpop.f32.mrb[19].mxu1 }
 0x5be   : > { %2425 = vrot.lane.b32.xlu0 %v2424_v21, %s2529_s4  ;;  %s3002_s4 = sld [smem:[#allocation14_spill]] (!%p2217_p5) }
 0x5c1   : > { %v1489_v23 = vpop.f32.mrb[20].mxu1 }
 0x5c2   : > { %v2336_v24 = vpop.f32.mrb[21].mxu1 }
 0x5c3   : > { %v1492_v25 = vpop.f32.mrb[22].mxu1  ;;  %v2459_v24 = vld [vmem:[%s2690_s5 + $0x8] sm:$0xff]  }
 0x5c4   : > { %v2429_v26 = vpack.i.bf16 %v1492_v25, %v1489_v23  ;;  %v2337_v27 = vpop.f32.mrb[23].mxu1  ;;  %v2458_v23 = vld [vmem:[%s2690_s5] sm:$0xff]   ;;  %v2460_v25 = vld [vmem:[%s2690_s5 + $0x10] sm:$0xff]  }
 0x5c5   : > { %v2462_v27 = vld [vmem:[%s2690_s5 + $0x20] sm:$0xff]  }
 0x5c6   : > { %2430 = vrot.lane.b32.xlu1 %v2429_v26, %s2530_s17  ;;  %v2461_v26 = vld [vmem:[%s2690_s5 + $0x18] sm:$0xff]  }
 0x628   : > { %v2421_v28 = vpop.permute.xlu1 %2420 }
 0x629   : > { %v2423_v30 = vunpack.i.h.bf16 %v2421_v28  ;;  %v2422_v32 = vunpack.i.l.bf16 %v2421_v28  ;;  %v2463_v28 = vld [vmem:[%s2690_s5 + $0x28] sm:$0xff]  }
 0x62b   : > { %v1521_v36 = vsel %vm1015_vm3, %v1126_v7, %v2423_v30  ;;  %v1520_v37 = vsel %vm1015_vm3, %v1123_v5, %v2422_v32  ;;  %v2457_v5 = vld [vmem:[%s2680_s3 + $0x18] sm:$0xff]   ;;  %s2997_s3 = scalar_lea.vmem %s2962_s9, %s2645_s20  ;;  %v2200_v32 = vld [vmem:[%s748_s29] ss:$0 sm:$0xff] }
 0x62c   : > { %2357 = vmatpush3.bf16.msra.mxu1 %v2457_v5  ;;  %v2198_v14 = vld [vmem:[%s2997_s3] ss:$0 sm:$0xff]  ;;  %v2465_v30 = vld [vmem:[%s2690_s5 + $0x38] sm:$0xff]  }
 0x630   : > { %v2426_v29 = vpop.permute.xlu0 %2425 }
 0x631   : > { %v2428_v33 = vunpack.i.h.bf16 %v2426_v29  ;;  %v2427_v34 = vunpack.i.l.bf16 %v2426_v29  ;;  %v2464_v29 = vld [vmem:[%s2690_s5 + $0x30] sm:$0xff]   ;;  %s3001_s5 = sld [smem:[#allocation13_spill]] (!%p2217_p5) }
 0x633   : > { %v1524_v42 = vsel %vm1522_vm4, %v1521_v36, %v2428_v33  ;;  %v1523_v44 = vsel %vm1522_vm4, %v1520_v37, %v2427_v34 }
 0x638   : > { %v2431_v35 = vpop.permute.xlu1 %2430 }
 0x639   : > { %v2433_v38 = vunpack.i.h.bf16 %v2431_v35  ;;  %v2432_v39 = vunpack.i.l.bf16 %v2431_v35 }
 0x63b   : > { %v1527_v45 = vsel %vm1525_vm5, %v1524_v42, %v2433_v38  ;;  %v1526_v46 = vsel %vm1525_vm5, %v1523_v44, %v2432_v39 }
 0x63c   : > { %v1536_v47 = vpack.c.bf16 %v1527_v45, %v1526_v46 }
 0x63e   : > { %2347 = vmatmul.mubr.msk.bf16.vlgmr.msra.gmra.mrb[16].mxu0 %vm922_vm1, %v1536_v47 }
 0x63f   : > { %2378 = vmatprep.mubr.msk.bf16.mxu0 %vm2524_vm2, %v2523_v43  ;;  %2363 = vmatpush3.bf16.msra.mxu0 %v2458_v23 }
 0x640   : > { %2364 = vmatprep.subr.bf16.mxu0 %v2523_v43 }
 0x643   : > { %2365 = vmatpush3.bf16.msra.mxu0 %v2459_v24  ;;  %v2216_v24 = vld [vmem:[%s762_s2] ss:$0 sm:$0xff] }
 0x644   : > { %2366 = vmatprep.subr.bf16.mxu0 %v2523_v43 }
 0x647   : > { %2367 = vmatpush3.bf16.msra.mxu0 %v2460_v25 }
 0x648   : > { %2368 = vmatprep.subr.bf16.mxu0 %v2523_v43 }
 0x64b   : > { %2369 = vmatpush3.bf16.msra.mxu0 %v2461_v26 }
 0x64c   : > { %2370 = vmatprep.subr.bf16.mxu0 %v2523_v43 }
 0x64f   : > { %2371 = vmatpush3.bf16.msra.mxu0 %v2462_v27 }
 0x650   : > { %2372 = vmatprep.subr.bf16.mxu0 %v2523_v43 }
 0x653   : > { %2373 = vmatpush3.bf16.msra.mxu0 %v2463_v28 }
 0x654   : > { %2374 = vmatprep.subr.bf16.mxu0 %v2523_v43 }
 0x657   : > { %2375 = vmatpush3.bf16.msra.mxu0 %v2464_v29 }
 0x658   : > { %2376 = vmatprep.subr.bf16.mxu0 %v2523_v43 }
 0x65b   : > { %2377 = vmatpush3.bf16.msra.mxu0 %v2465_v30  ;;  %v2510_v30 = vld [vmem:[%s2999_s1] sm:$0xff] (!%p2217_p5)  }
 0x711   : > { %v1605_v49 = vpop.f32.mrb[16].mxu0 }
 0x712   : > { %v1606_v50 = vadd.f32 %v2192_v48, %v1605_v49  ;;  %v2348_v31 = vpop.f32.mrb[17].mxu0 }
 0x713   : > { %v1608_v51 = vpop.f32.mrb[18].mxu0 }
 0x714   : > { %v1609_v52 = vadd.f32 %v2192_v48, %v1608_v51  ;;  %v2349_v53 = vpop.f32.mrb[19].mxu0  ;;  %v1612_v54 = vadd.f32 %v1606_v50, %v2728_v40 }
 0x716   : > { %v1616_v55 = vsel %vm922_vm1, %v1612_v54, 0.0  ;;  %v1613_v56 = vadd.f32 %v1609_v52, %v2730_v41 }
 0x717   : > { %1617 = vadd.xlane.f32.xlu0 %v1616_v55 }
 0x718   : > { %v1619_v57 = vsel %vm922_vm1, %v1613_v56, 0.0 }
 0x719   : > { %1620 = vadd.xlane.f32.xlu1 %v1619_v57 }
 0x7a4   : > { %v1618_v58 = vpop.xlane.xlu0 %1617 }
 0x7a5   : > { %v1623_v59 = vmul.f32 0.015625, %v1618_v58 }
 0x7a6   : > { %v1621_v60 = vpop.xlane.xlu1 %1620 }
 0x7a7   : > { %v1625_v61 = vsub.f32 %v1612_v54, %v1623_v59  ;;  %v1624_v62 = vmul.f32 0.015625, %v1621_v60  ;;  %v2206_v59 = vld [vmem:[%s756_s7] ss:$0 sm:$0xff] }
 0x7a9   : > { %v1626_v63 = vsub.f32 %v1613_v56, %v1624_v62  ;;  %v1627_v0 = vmul.f32 %v1625_v61, %v1625_v61 }
 0x7ab   : > { %v1629_v40 = vsel %vm922_vm1, %v1627_v0, 0.0  ;;  %v1628_v1 = vmul.f32 %v1626_v63, %v1626_v63 }
 0x7ac   : > { %1630 = vadd.xlane.f32.xlu0 %v1629_v40 }
 0x7ad   : > { %v1632_v41 = vsel %vm922_vm1, %v1628_v1, 0.0 }
 0x7b0   : > { %1633 = vadd.xlane.f32.xlu0 %v1632_v41 }
 0x839   : > { %v1631_v6 = vpop.xlane.xlu0 %1630 }
 0x83a   : > { %v1635_v7 = vmul.f32 0.015625, %v1631_v6 }
 0x83c   : > { %v1637_v8 = vadd.f32 1e-12, %v1635_v7 }
 0x83d   : > { %v1634_v9 = vpop.xlane.xlu0 %1633 }
 0x83e   : > { %2498 = vrsqrt.f32 %v1637_v8  ;;  %v1636_v10 = vmul.f32 0.015625, %v1634_v9 }
 0x840   : > { %v1638_v11 = vadd.f32 1e-12, %v1636_v10 }
 0x842   : > { %2500 = vrsqrt.f32 %v1638_v11 }
 0x848   : > { %v2499_v12 = vpop.eup %2498 }
 0x849   : > { %v1641_v13 = vmul.f32 %v2499_v12, %v1625_v61 }
 0x84b   : > { %v1649_v16 = vmul.f32 %v2198_v14, %v1641_v13 }
 0x84c   : > { %v2501_v15 = vpop.eup %2500 }
 0x84d   : > { %v1642_v17 = vmul.f32 %v2501_v15, %v1626_v63  ;;  %v2877_v20 = vadd.f32 %v2199_v18, %v1649_v16 }
 0x84f   : > { %v1650_v19 = vmul.f32 %v2198_v14, %v1642_v17 }
 0x851   : > { %v2879_v21 = vadd.f32 %v2199_v18, %v1650_v19 }
 0x853   : > { %v1667_v22 = vpack.c.bf16 %v2879_v21, %v2877_v20 }
 0x855   : > { %2359 = vmatmul.mubr.msk.bf16.vlgmr.msra.gmra.mrb[24].mxu1 %vm922_vm1, %v1667_v22 }
 0x928   : > { %v1736_v33 = vpop.f32.mrb[24].mxu1 }
 0x929   : > { %v1737_v34 = vadd.f32 %v2200_v32, %v1736_v33  ;;  %v2360_v35 = vpop.f32.mrb[25].mxu1  ;;  %v2511_v33 = vld [vmem:[%s2999_s1 + $0x8] sm:$0xff] (!%p2217_p5)  }
 0x92a   : > { %v1739_v36 = vpop.f32.mrb[26].mxu1  ;;  %v2512_v35 = vld [vmem:[%s2999_s1 + $0x10] sm:$0xff] (!%p2217_p5)  }
 0x92b   : > { %v1745_v37 = vmul.f32 0.044715, %v1737_v34  ;;  %v1740_v38 = vadd.f32 %v2200_v32, %v1739_v36  ;;  %v2361_v39 = vpop.f32.mrb[27].mxu1  ;;  %v1743_v53 = vmul.f32 0.5, %v1737_v34  ;;  %v2531_v32 = vmov (!%p2217_p5), 0.0  }
 0x92c   : > { %2382 = vmatprep.subr.bf16.mxu0 (!%p2217_p5), %v2531_v32  ;;  %v2513_v39 = vld [vmem:[%s2999_s1 + $0x18] sm:$0xff] (!%p2217_p5)  }
 0x92d   : > { %v1747_v42 = vmul.f32 %v1745_v37, %v1737_v34  ;;  %v1746_v44 = vmul.f32 0.044715, %v1740_v38  ;;  %v1744_v54 = vmul.f32 0.5, %v1740_v38  ;;  %v1931_v37 = vld [vmem:[%s3000_s27] sm:$0x3] (!%p2217_p5) }
 0x92f   : > { %v1749_v45 = vmul.f32 %v1747_v42, %v1737_v34  ;;  %v1748_v46 = vmul.f32 %v1746_v44, %v1740_v38  ;;  %v2218_v44 = vld [vmem:[%s3001_s5] ss:$0 sm:$0xff] (!%p2217_p5) }
 0x931   : > { %v1751_v47 = vadd.f32 %v1749_v45, %v1737_v34  ;;  %v1750_v48 = vmul.f32 %v1748_v46, %v1740_v38 }
 0x933   : > { %v1753_v43 = vmul.f32 0.7978846, %v1751_v47  ;;  %v1752_v49 = vadd.f32 %v1750_v48, %v1740_v38 }
 0x935   : > { %2502 = vtanh.f32 %v1753_v43  ;;  %v1754_v50 = vmul.f32 0.7978846, %v1752_v49 }
 0x937   : > { %2504 = vtanh.f32 %v1754_v50 }
 0x93f   : > { %v2503_v31 = vpop.eup %2502 }
 0x940   : > { %v1757_v51 = vadd.f32 1.0, %v2503_v31 }
 0x941   : > { %v2505_v52 = vpop.eup %2504 }
 0x942   : > { %v1758_v55 = vadd.f32 1.0, %v2505_v52  ;;  %v1759_v56 = vmul.f32 %v1757_v51, %v1743_v53 }
 0x944   : > { %v1760_v57 = vmul.f32 %v1758_v55, %v1744_v54 }
 0x946   : > { %v1777_v58 = vpack.c.bf16 %v1760_v57, %v1759_v56 }
 0x948   : > { %2379 = vmatmul.mubr.bf16.vlgmr.msra.gmra.mrb[20].mxu0 %v1777_v58 }
 0x949   : > { %2383 = vmatpush3.bf16.msra.mxu0 (!%p2217_p5), %v2510_v30  ;;  %2390 = vmatprep.mubr.msk.bf16.mxu0 (!%p2217_p5), %vm2532_vm6, %v2531_v32 }
 0x94a   : > { %2384 = vmatprep.subr.bf16.mxu0 (!%p2217_p5), %v2531_v32 }
 0x94d   : > { %2385 = vmatpush3.bf16.msra.mxu0 (!%p2217_p5), %v2511_v33 }
 0x94e   : > { %2386 = vmatprep.subr.bf16.mxu0 (!%p2217_p5), %v2531_v32 }
 0x951   : > { %2387 = vmatpush3.bf16.msra.mxu0 (!%p2217_p5), %v2512_v35 }
 0x952   : > { %2388 = vmatprep.subr.bf16.mxu0 (!%p2217_p5), %v2531_v32 }
 0x955   : > { %2389 = vmatpush3.bf16.msra.mxu0 (!%p2217_p5), %v2513_v39 }
 0xa1b   : > { %v1867_v60 = vpop.f32.mrb[20].mxu0 }
 0xa1c   : > { %v1868_v61 = vadd.f32 %v2206_v59, %v1867_v60  ;;  %v2380_v62 = vpop.f32.mrb[21].mxu0 }
 0xa1d   : > { %v1870_v63 = vpop.f32.mrb[22].mxu0 }
 0xa1e   : > { %v1871_v0 = vadd.f32 %v2206_v59, %v1870_v63  ;;  %v2381_v40 = vpop.f32.mrb[23].mxu0  ;;  %v1874_v1 = vadd.f32 %v1868_v61, %v2877_v20 }
 0xa20   : > { %v1878_v41 = vsel %vm922_vm1, %v1874_v1, 0.0  ;;  %v1875_v2 = vadd.f32 %v1871_v0, %v2879_v21  ;;  %v2215_v21 = vld [vmem:[%s759_s25] ss:$0 sm:$0xff] }
 0xa21   : > { %1879 = vadd.xlane.f32.xlu1 %v1878_v41 }
 0xa22   : > { %v1881_v3 = vsel %vm922_vm1, %v1875_v2, 0.0 }
 0xa23   : > { %1882 = vadd.xlane.f32.xlu0 %v1881_v3 }
 0xaae   : > { %v1880_v4 = vpop.xlane.xlu1 %1879 }
 0xaaf   : > { %v1884_v5 = vmul.f32 0.015625, %v1880_v4 }
 0xab0   : > { %v1883_v6 = vpop.xlane.xlu0 %1882 }
 0xab1   : > { %v1886_v7 = vsub.f32 %v1874_v1, %v1884_v5  ;;  %v1885_v8 = vmul.f32 0.015625, %v1883_v6 }
 0xab3   : > { %v1887_v9 = vsub.f32 %v1875_v2, %v1885_v8  ;;  %v1888_v10 = vmul.f32 %v1886_v7, %v1886_v7 }
 0xab5   : > { %v1890_v11 = vsel %vm922_vm1, %v1888_v10, 0.0  ;;  %v1889_v12 = vmul.f32 %v1887_v9, %v1887_v9 }
 0xab6   : > { %1891 = vadd.xlane.f32.xlu1 %v1890_v11 }
 0xab7   : > { %v1893_v13 = vsel %vm922_vm1, %v1889_v12, 0.0 }
 0xab8   : > { %1894 = vadd.xlane.f32.xlu0 %v1893_v13 }
 0xb43   : > { %v1892_v14 = vpop.xlane.xlu1 %1891 }
 0xb44   : > { %v1896_v15 = vmul.f32 0.015625, %v1892_v14 }
 0xb45   : > { %v1895_v16 = vpop.xlane.xlu0 %1894 }
 0xb46   : > { %v1898_v17 = vadd.f32 1e-12, %v1896_v15  ;;  %v1897_v18 = vmul.f32 0.015625, %v1895_v16 }
 0xb48   : > { %2506 = vrsqrt.f32 %v1898_v17  ;;  %v1899_v19 = vadd.f32 1e-12, %v1897_v18 }
 0xb4a   : > { %2508 = vrsqrt.f32 %v1899_v19 }
 0xb52   : > { %v2507_v20 = vpop.eup %2506 }
 0xb53   : > { %v1902_v22 = vmul.f32 %v2507_v20, %v1886_v7 }
 0xb54   : > { %v2509_v23 = vpop.eup %2508 }
 0xb55   : > { %v1910_v25 = vmul.f32 %v2215_v21, %v1902_v22  ;;  %v1903_v26 = vmul.f32 %v2509_v23, %v1887_v9  ;;  %1925 = sbr.rel (%p2217_p5) target bundleno = 3129 (0xc39), region = 104 }
 0xb57   : > { %v1918_v27 = vadd.f32 %v2216_v24, %v1910_v25  ;;  %v1911_v28 = vmul.f32 %v2215_v21, %v1903_v26 }
 0xb59   : > { %1920 = vst.msk [vmem:[#allocation2] sm:$0xff] %vm922_vm1, %v1918_v27  ;;  %v1919_v29 = vadd.f32 %v2216_v24, %v1911_v28 }
 0xb5b   : > { %1921 = vst.msk [vmem:[#allocation2 + $0x8] sm:$0xff] %vm922_vm1, %v1919_v29  ;;  %v1927_v34 = vrot.slane (!%p2217_p5), %v1919_v29, 7 }
 0xb5d   : > { %v1930_v36 = vsel %vm1929_vm7, %v1918_v27, %v1927_v34 }
 0xb5e   : > { %v1932_v38 = vadd.f32 %v1931_v37, %v1930_v36 }
 0xb60   : > { %v1941_v42 = vpack.c.bf16 %v1932_v38, %v1932_v38 }
 0xb62   : > { %2391 = vmatmul.mubr.msk.bf16.vlgmr.msra.gmra.mrb[0].mxu0 %vm922_vm1, %v1941_v42 }
 0xc35   : > { %v2010_v45 = vpop.f32.mrb[0].mxu0 }
 0xc36   : > { %v2011_v46 = vadd.f32 %v2218_v44, %v2010_v45  ;;  %v2392_v47 = vpop.f32.mrb[1].mxu0 }
 0xc37   : > { %v2013_v48 = vpop.f32.mrb[2].mxu0 }
 0xc38   : > { %2016 = vst [vmem:[%s3002_s4] sm:$0x3] %v2011_v46  ;;  %v2393_v43 = vpop.f32.mrb[3].mxu0 }
 0xc39 PF: > { %s3003_s17 = sld [smem:[#allocation3_spill]] }
 0xc3f   : > { %s29_s0 = sadd.s32 1, %s3003_s17  }
 0xc40   : > { %p26_p6 = scmp.ge.s32.totalorder %s29_s0, 4  }
 0xc42   :  { %28 = sbr.rel (!%p26_p6) target bundleno = 11 (0xb), region = 163 }

</bundles_post_ra>
